<compile_context>
chip_gen: v5e
topology: v5e:2x2
jax: 0.10.0
libtpu: 0.0.40
codegen_flags: <defaults>
</compile_context>

<pallas_src>
import functools

import jax
import jax.numpy as jnp
from jax.experimental import pallas as pl
from jax.experimental.pallas import tpu as pltpu


# -----------------------------------------------------------------------------
# Fused kernel: LSTM (batch_first, PyTorch gate order i,f,g,o)
#               -> multi-head self-attention -> fc1
# -----------------------------------------------------------------------------
def _fused_kernel(x_ref, w_ih_t_ref, w_hh_t_ref, b_lstm_ref,
                  wq_t_ref, wk_t_ref, wv_t_ref, bq_ref, bk_ref, bv_ref,
                  wo_rep_ref, bo_ref, w1_ref, b1_ref, out_ref,
                  *, hidden_dim, num_heads):
    f32 = jnp.float32
    B, T, _ = x_ref.shape
    H = hidden_dim
    nh = num_heads
    hd = H // nh

    # ------------------------------ LSTM ------------------------------
    # Hoisted input projection + bias: one matmul over all timesteps.
    x = x_ref[...]                                            # (B, T, D_in)
    xp = (jnp.einsum('btd,dk->btk', x, w_ih_t_ref[...],
                     preferred_element_type=f32)
          + b_lstm_ref[...])                                  # (B, T, 4H)

    w_hh_t = w_hh_t_ref[...]                                  # (H, 4H), loaded once
    h = jnp.zeros((B, H), f32)
    c = jnp.zeros((B, H), f32)
    hs = []
    # Fully unrolled recurrence: per step only the (B,H)x(H,4H) recurrent matmul
    # plus activations sit on the serial dependency chain.
    for t in range(T):
        gates = xp[:, t, :] + jnp.dot(h, w_hh_t,
                                      preferred_element_type=f32)   # (B, 4H)
        # Full-width activations, then slice (PyTorch gate order i, f, g, o).
        sig = jax.nn.sigmoid(gates)
        tah = jnp.tanh(gates)
        i_g = sig[:, 0:H]
        f_g = sig[:, H:2 * H]
        o_g = sig[:, 3 * H:4 * H]
        g_g = tah[:, 2 * H:3 * H]
        c = f_g * c + i_g * g_g
        h = o_g * jnp.tanh(c)
        hs.append(h)
    x_a = jnp.stack(hs, axis=1)                               # (B, T, H)

    # -------------------- Multi-head self-attention --------------------
    scale = jnp.float32(1.0 / (hd ** 0.5))
    q = jnp.einsum('bth,hk->btk', x_a, wq_t_ref[...],
                   preferred_element_type=f32) + bq_ref[...]
    k = jnp.einsum('bth,hk->btk', x_a, wk_t_ref[...],
                   preferred_element_type=f32) + bk_ref[...]
    v = jnp.einsum('bth,hk->btk', x_a, wv_t_ref[...],
                   preferred_element_type=f32) + bv_ref[...]
    q = q * scale

    def split_heads(z):
        # (B, T, H) -> (nh*B, T, hd): heads folded into the leading batch axis
        # (index n = head*B + b), so scores / values use single-batch-dim einsums.
        zh = jnp.stack([z[:, :, i * hd:(i + 1) * hd] for i in range(nh)], axis=0)
        return zh.reshape(nh * B, T, hd)

    qh = split_heads(q)
    kh = split_heads(k)
    vh = split_heads(v)

    s = jnp.einsum('nqd,nkd->nqk', qh, kh,
                   preferred_element_type=f32)                # (nh*B, T, T)
    s = s - jnp.max(s, axis=-1, keepdims=True)
    p = jnp.exp(s)
    p = p * pl.reciprocal(jnp.sum(p, axis=-1, keepdims=True), approx=True)
    o_h = jnp.einsum('nqk,nkd->nqd', p, vh,
                     preferred_element_type=f32)              # (nh*B, T, hd)

    # Out-projection folded per head: wo_rep[n] = WoT[head(n)*hd:(head(n)+1)*hd, :].
    # Head re-combination becomes a sum of per-head contributions (no lane concat).
    parts = jnp.einsum('nqd,ndh->nqh', o_h, wo_rep_ref[...],
                       preferred_element_type=f32)            # (nh*B, T, H)
    attn = parts[0:B]
    for i in range(1, nh):
        attn = attn + parts[i * B:(i + 1) * B]
    attn = attn + bo_ref[...]                                 # (B, T, H)

    # ------------- fc1 as a VPU reduction (avoid N=1 MXU matmul) -------------
    y = jnp.sum(attn * w1_ref[...], axis=-1) + b1_ref[...]    # (B, T)
    out_ref[...] = y.astype(out_ref.dtype)


# -----------------------------------------------------------------------------
# Parameters (PyTorch layouts) + full forward (matches DiffusionModel.forward)
# -----------------------------------------------------------------------------
def init_params(key, input_dim, condition_dim, hidden_dim):
    d_in = input_dim + condition_dim + 1
    h = hidden_dim
    keys = jax.random.split(key, 12)
    s = 0.1
    params = {
        # LSTM (PyTorch layout: weight_ih (4H, D_in), weight_hh (4H, H))
        "w_ih": jax.random.normal(keys[0], (4 * h, d_in), jnp.float32) * s,
        "w_hh": jax.random.normal(keys[1], (4 * h, h), jnp.float32) * s,
        "b_ih": jax.random.normal(keys[2], (4 * h,), jnp.float32) * s,
        "b_hh": jax.random.normal(keys[3], (4 * h,), jnp.float32) * s,
        # MultiheadAttention in_proj (split into q/k/v) + out_proj
        "wq": jax.random.normal(keys[4], (h, h), jnp.float32) * s,
        "wk": jax.random.normal(keys[5], (h, h), jnp.float32) * s,
        "wv": jax.random.normal(keys[6], (h, h), jnp.float32) * s,
        "bq": jax.random.normal(keys[7], (h,), jnp.float32) * s,
        "bk": jnp.zeros((h,), jnp.float32),
        "bv": jax.random.normal(keys[8], (h,), jnp.float32) * s,
        "wo": jax.random.normal(keys[9], (h, h), jnp.float32) * s,
        "bo": jax.random.normal(keys[10], (h,), jnp.float32) * s,
        # fc1: Linear(hidden_dim, 1)
        "w1": jax.random.normal(keys[11], (1, h), jnp.float32) * s,
        "b1": jnp.zeros((1,), jnp.float32),
    }
    return params


def diffusion_model_forward(params, x, condition, timesteps, hidden_dim, num_heads):
    # x: (B, T, input_dim); condition: (B, T, condition_dim); timesteps: (B,)
    B, T, _ = x.shape
    H = hidden_dim
    nh = num_heads
    assert H % nh == 0
    hd = H // nh
    f32 = jnp.float32

    t_exp = jnp.broadcast_to(timesteps.astype(f32)[:, None, None], (B, T, 1))
    combined = jnp.concatenate([x.astype(f32), condition.astype(f32), t_exp],
                               axis=2)                        # (B, T, D_in)

    # Weight repacking (cheap, XLA-side; would be done once for fixed weights).
    w_ih_t = params["w_ih"].T.astype(f32)                     # (D_in, 4H)
    w_hh_t = params["w_hh"].T.astype(f32)                     # (H, 4H)
    b_lstm = (params["b_ih"] + params["b_hh"]).reshape(1, -1).astype(f32)

    wq_t = params["wq"].T.astype(f32)
    wk_t = params["wk"].T.astype(f32)
    wv_t = params["wv"].T.astype(f32)
    bq = params["bq"].reshape(1, -1).astype(f32)
    bk = params["bk"].reshape(1, -1).astype(f32)
    bv = params["bv"].reshape(1, -1).astype(f32)
    # Per-head slices of out_proj.weight.T, replicated per batch element so the
    # kernel consumes them with a single-batch-dim einsum: (nh*B, hd, H).
    wo_rep = jnp.repeat(params["wo"].T.astype(f32).reshape(nh, hd, H), B, axis=0)
    bo = params["bo"].reshape(1, -1).astype(f32)
    w1 = params["w1"].reshape(1, -1).astype(f32)
    b1 = params["b1"].reshape(1, 1).astype(f32)

    kernel = functools.partial(_fused_kernel, hidden_dim=H, num_heads=nh)
    vmem = pl.BlockSpec(memory_space=pltpu.MemorySpace.VMEM)
    out_bt = pl.pallas_call(
        kernel,
        out_shape=jax.ShapeDtypeStruct((B, T), f32),
        in_specs=[vmem] * 14,
        out_specs=vmem,
    )(combined, w_ih_t, w_hh_t, b_lstm,
      wq_t, wk_t, wv_t, bq, bk, bv,
      wo_rep, bo, w1, b1)

    # dropout layers -> identity (eval mode)
    return out_bt[:, :, None]                                 # (B, T, 1)


if __name__ == "__main__":
    B, T = 2, 8
    input_dim, condition_dim = 5, 2
    hidden_dim, num_heads = 32, 8

    key = jax.random.PRNGKey(0)
    kx, kc, kt, kp = jax.random.split(key, 4)
    x = jax.random.normal(kx, (B, T, input_dim), jnp.float32)
    condition = jax.random.normal(kc, (B, T, condition_dim), jnp.float32)
    timesteps = jax.random.randint(kt, (B,), 0, 100).astype(jnp.float32)

    params = init_params(kp, input_dim, condition_dim, hidden_dim)

    out = diffusion_model_forward(params, x, condition, timesteps,
                                  hidden_dim, num_heads)
    out = jax.block_until_ready(out)
    assert out.shape == (B, T, 1), out.shape
    print("KERNEL_OK")
</pallas_src>

<mosaic_0001>
module attributes {stable_mosaic.version = 11 : i64} {
  func.func @_fused_kernel(%arg0: memref<2x8x8xf32, #tpu.memory_space<vmem>>, %arg1: memref<8x128xf32, #tpu.memory_space<vmem>>, %arg2: memref<32x128xf32, #tpu.memory_space<vmem>>, %arg3: memref<1x128xf32, #tpu.memory_space<vmem>>, %arg4: memref<32x32xf32, #tpu.memory_space<vmem>>, %arg5: memref<32x32xf32, #tpu.memory_space<vmem>>, %arg6: memref<32x32xf32, #tpu.memory_space<vmem>>, %arg7: memref<1x32xf32, #tpu.memory_space<vmem>>, %arg8: memref<1x32xf32, #tpu.memory_space<vmem>>, %arg9: memref<1x32xf32, #tpu.memory_space<vmem>>, %arg10: memref<16x4x32xf32, #tpu.memory_space<vmem>>, %arg11: memref<1x32xf32, #tpu.memory_space<vmem>>, %arg12: memref<1x32xf32, #tpu.memory_space<vmem>>, %arg13: memref<1x1xf32, #tpu.memory_space<vmem>>, %arg14: memref<2x8xf32, #tpu.memory_space<vmem>>) attributes {dimension_semantics = [], scalar_prefetch = 0 : i64, scratch_operands = 0 : i64, tpu.core_type = #tpu.core_type<tc>} {
    %c0 = arith.constant 0 : index
    %c0_0 = arith.constant 0 : index
    %c0_1 = arith.constant 0 : index
    %0 = vector.load %arg0[%c0, %c0_0, %c0_1] : memref<2x8x8xf32, #tpu.memory_space<vmem>>, vector<2x8x8xf32>
    %c0_2 = arith.constant 0 : index
    %c0_3 = arith.constant 0 : index
    %1 = vector.load %arg1[%c0_2, %c0_3] : memref<8x128xf32, #tpu.memory_space<vmem>>, vector<8x128xf32>
    "tpu.trace_start"() <{level = 10 : i32, message = "btd,dk->btk"}> : () -> ()
    %cst = arith.constant dense<0.000000e+00> : vector<2x8x128xf32>
    %2 = tpu.matmul %0, %1, %cst {dimension_numbers = #tpu.dot_dimension_numbers<[2], [0], [0, 1], [1], [0, 0, 0, 1, 1, 1], [], []>} : vector<2x8x8xf32>, vector<8x128xf32>, vector<2x8x128xf32> -> vector<2x8x128xf32>
    "tpu.trace_stop"() : () -> ()
    %c0_4 = arith.constant 0 : index
    %c0_5 = arith.constant 0 : index
    %3 = vector.load %arg3[%c0_4, %c0_5] : memref<1x128xf32, #tpu.memory_space<vmem>>, vector<1x128xf32>
    %4 = vector.shape_cast %3 : vector<1x128xf32> to vector<1x1x128xf32>
    %5 = vector.broadcast %4 : vector<1x1x128xf32> to vector<2x8x128xf32>
    %6 = arith.addf %2, %5 : vector<2x8x128xf32>
    %c0_6 = arith.constant 0 : index
    %c0_7 = arith.constant 0 : index
    %7 = vector.load %arg2[%c0_6, %c0_7] : memref<32x128xf32, #tpu.memory_space<vmem>>, vector<32x128xf32>
    %cst_8 = arith.constant 0.000000e+00 : f32
    %8 = vector.broadcast %cst_8 : f32 to vector<2x32xf32>
    %cst_9 = arith.constant 0.000000e+00 : f32
    %9 = vector.broadcast %cst_9 : f32 to vector<2x32xf32>
    %10 = vector.extract_strided_slice %6 {offsets = [0, 0, 0], sizes = [2, 1, 128], strides = [1, 1, 1]} : vector<2x8x128xf32> to vector<2x1x128xf32>
    %11 = vector.shape_cast %10 : vector<2x1x128xf32> to vector<2x128xf32>
    %cst_10 = arith.constant dense<0.000000e+00> : vector<2x128xf32>
    %12 = tpu.matmul %8, %7, %cst_10 {dimension_numbers = #tpu.dot_dimension_numbers<[1], [0], [0], [1], [0, 0, 1, 1], [], []>} : vector<2x32xf32>, vector<32x128xf32>, vector<2x128xf32> -> vector<2x128xf32>
    %13 = arith.addf %11, %12 : vector<2x128xf32>
    %14 = arith.negf %13 : vector<2x128xf32>
    %15 = math.exp %14 : vector<2x128xf32>
    %cst_11 = arith.constant 1.000000e+00 : f32
    %16 = vector.broadcast %cst_11 : f32 to vector<2x128xf32>
    %17 = arith.addf %16, %15 : vector<2x128xf32>
    %18 = arith.divf %16, %17 : vector<2x128xf32>
    %19 = math.tanh %13 : vector<2x128xf32>
    %20 = vector.extract_strided_slice %18 {offsets = [0, 0], sizes = [2, 32], strides = [1, 1]} : vector<2x128xf32> to vector<2x32xf32>
    %21 = vector.extract_strided_slice %18 {offsets = [0, 32], sizes = [2, 32], strides = [1, 1]} : vector<2x128xf32> to vector<2x32xf32>
    %22 = vector.extract_strided_slice %18 {offsets = [0, 96], sizes = [2, 32], strides = [1, 1]} : vector<2x128xf32> to vector<2x32xf32>
    %23 = vector.extract_strided_slice %19 {offsets = [0, 64], sizes = [2, 32], strides = [1, 1]} : vector<2x128xf32> to vector<2x32xf32>
    %24 = arith.mulf %21, %9 : vector<2x32xf32>
    %25 = arith.mulf %20, %23 : vector<2x32xf32>
    %26 = arith.addf %24, %25 : vector<2x32xf32>
    %27 = math.tanh %26 : vector<2x32xf32>
    %28 = arith.mulf %22, %27 : vector<2x32xf32>
    %29 = vector.extract_strided_slice %6 {offsets = [0, 1, 0], sizes = [2, 1, 128], strides = [1, 1, 1]} : vector<2x8x128xf32> to vector<2x1x128xf32>
    %30 = vector.shape_cast %29 : vector<2x1x128xf32> to vector<2x128xf32>
    %cst_12 = arith.constant dense<0.000000e+00> : vector<2x128xf32>
    %31 = tpu.matmul %28, %7, %cst_12 {dimension_numbers = #tpu.dot_dimension_numbers<[1], [0], [0], [1], [0, 0, 1, 1], [], []>} : vector<2x32xf32>, vector<32x128xf32>, vector<2x128xf32> -> vector<2x128xf32>
    %32 = arith.addf %30, %31 : vector<2x128xf32>
    %33 = arith.negf %32 : vector<2x128xf32>
    %34 = math.exp %33 : vector<2x128xf32>
    %cst_13 = arith.constant 1.000000e+00 : f32
    %35 = vector.broadcast %cst_13 : f32 to vector<2x128xf32>
    %36 = arith.addf %35, %34 : vector<2x128xf32>
    %37 = arith.divf %35, %36 : vector<2x128xf32>
    %38 = math.tanh %32 : vector<2x128xf32>
    %39 = vector.extract_strided_slice %37 {offsets = [0, 0], sizes = [2, 32], strides = [1, 1]} : vector<2x128xf32> to vector<2x32xf32>
    %40 = vector.extract_strided_slice %37 {offsets = [0, 32], sizes = [2, 32], strides = [1, 1]} : vector<2x128xf32> to vector<2x32xf32>
    %41 = vector.extract_strided_slice %37 {offsets = [0, 96], sizes = [2, 32], strides = [1, 1]} : vector<2x128xf32> to vector<2x32xf32>
    %42 = vector.extract_strided_slice %38 {offsets = [0, 64], sizes = [2, 32], strides = [1, 1]} : vector<2x128xf32> to vector<2x32xf32>
    %43 = arith.mulf %40, %26 : vector<2x32xf32>
    %44 = arith.mulf %39, %42 : vector<2x32xf32>
    %45 = arith.addf %43, %44 : vector<2x32xf32>
    %46 = math.tanh %45 : vector<2x32xf32>
    %47 = arith.mulf %41, %46 : vector<2x32xf32>
    %48 = vector.extract_strided_slice %6 {offsets = [0, 2, 0], sizes = [2, 1, 128], strides = [1, 1, 1]} : vector<2x8x128xf32> to vector<2x1x128xf32>
    %49 = vector.shape_cast %48 : vector<2x1x128xf32> to vector<2x128xf32>
    %cst_14 = arith.constant dense<0.000000e+00> : vector<2x128xf32>
    %50 = tpu.matmul %47, %7, %cst_14 {dimension_numbers = #tpu.dot_dimension_numbers<[1], [0], [0], [1], [0, 0, 1, 1], [], []>} : vector<2x32xf32>, vector<32x128xf32>, vector<2x128xf32> -> vector<2x128xf32>
    %51 = arith.addf %49, %50 : vector<2x128xf32>
    %52 = arith.negf %51 : vector<2x128xf32>
    %53 = math.exp %52 : vector<2x128xf32>
    %cst_15 = arith.constant 1.000000e+00 : f32
    %54 = vector.broadcast %cst_15 : f32 to vector<2x128xf32>
    %55 = arith.addf %54, %53 : vector<2x128xf32>
    %56 = arith.divf %54, %55 : vector<2x128xf32>
    %57 = math.tanh %51 : vector<2x128xf32>
    %58 = vector.extract_strided_slice %56 {offsets = [0, 0], sizes = [2, 32], strides = [1, 1]} : vector<2x128xf32> to vector<2x32xf32>
    %59 = vector.extract_strided_slice %56 {offsets = [0, 32], sizes = [2, 32], strides = [1, 1]} : vector<2x128xf32> to vector<2x32xf32>
    %60 = vector.extract_strided_slice %56 {offsets = [0, 96], sizes = [2, 32], strides = [1, 1]} : vector<2x128xf32> to vector<2x32xf32>
    %61 = vector.extract_strided_slice %57 {offsets = [0, 64], sizes = [2, 32], strides = [1, 1]} : vector<2x128xf32> to vector<2x32xf32>
    %62 = arith.mulf %59, %45 : vector<2x32xf32>
    %63 = arith.mulf %58, %61 : vector<2x32xf32>
    %64 = arith.addf %62, %63 : vector<2x32xf32>
    %65 = math.tanh %64 : vector<2x32xf32>
    %66 = arith.mulf %60, %65 : vector<2x32xf32>
    %67 = vector.extract_strided_slice %6 {offsets = [0, 3, 0], sizes = [2, 1, 128], strides = [1, 1, 1]} : vector<2x8x128xf32> to vector<2x1x128xf32>
    %68 = vector.shape_cast %67 : vector<2x1x128xf32> to vector<2x128xf32>
    %cst_16 = arith.constant dense<0.000000e+00> : vector<2x128xf32>
    %69 = tpu.matmul %66, %7, %cst_16 {dimension_numbers = #tpu.dot_dimension_numbers<[1], [0], [0], [1], [0, 0, 1, 1], [], []>} : vector<2x32xf32>, vector<32x128xf32>, vector<2x128xf32> -> vector<2x128xf32>
    %70 = arith.addf %68, %69 : vector<2x128xf32>
    %71 = arith.negf %70 : vector<2x128xf32>
    %72 = math.exp %71 : vector<2x128xf32>
    %cst_17 = arith.constant 1.000000e+00 : f32
    %73 = vector.broadcast %cst_17 : f32 to vector<2x128xf32>
    %74 = arith.addf %73, %72 : vector<2x128xf32>
    %75 = arith.divf %73, %74 : vector<2x128xf32>
    %76 = math.tanh %70 : vector<2x128xf32>
    %77 = vector.extract_strided_slice %75 {offsets = [0, 0], sizes = [2, 32], strides = [1, 1]} : vector<2x128xf32> to vector<2x32xf32>
    %78 = vector.extract_strided_slice %75 {offsets = [0, 32], sizes = [2, 32], strides = [1, 1]} : vector<2x128xf32> to vector<2x32xf32>
    %79 = vector.extract_strided_slice %75 {offsets = [0, 96], sizes = [2, 32], strides = [1, 1]} : vector<2x128xf32> to vector<2x32xf32>
    %80 = vector.extract_strided_slice %76 {offsets = [0, 64], sizes = [2, 32], strides = [1, 1]} : vector<2x128xf32> to vector<2x32xf32>
    %81 = arith.mulf %78, %64 : vector<2x32xf32>
    %82 = arith.mulf %77, %80 : vector<2x32xf32>
    %83 = arith.addf %81, %82 : vector<2x32xf32>
    %84 = math.tanh %83 : vector<2x32xf32>
    %85 = arith.mulf %79, %84 : vector<2x32xf32>
    %86 = vector.extract_strided_slice %6 {offsets = [0, 4, 0], sizes = [2, 1, 128], strides = [1, 1, 1]} : vector<2x8x128xf32> to vector<2x1x128xf32>
    %87 = vector.shape_cast %86 : vector<2x1x128xf32> to vector<2x128xf32>
    %cst_18 = arith.constant dense<0.000000e+00> : vector<2x128xf32>
    %88 = tpu.matmul %85, %7, %cst_18 {dimension_numbers = #tpu.dot_dimension_numbers<[1], [0], [0], [1], [0, 0, 1, 1], [], []>} : vector<2x32xf32>, vector<32x128xf32>, vector<2x128xf32> -> vector<2x128xf32>
    %89 = arith.addf %87, %88 : vector<2x128xf32>
    %90 = arith.negf %89 : vector<2x128xf32>
    %91 = math.exp %90 : vector<2x128xf32>
    %cst_19 = arith.constant 1.000000e+00 : f32
    %92 = vector.broadcast %cst_19 : f32 to vector<2x128xf32>
    %93 = arith.addf %92, %91 : vector<2x128xf32>
    %94 = arith.divf %92, %93 : vector<2x128xf32>
    %95 = math.tanh %89 : vector<2x128xf32>
    %96 = vector.extract_strided_slice %94 {offsets = [0, 0], sizes = [2, 32], strides = [1, 1]} : vector<2x128xf32> to vector<2x32xf32>
    %97 = vector.extract_strided_slice %94 {offsets = [0, 32], sizes = [2, 32], strides = [1, 1]} : vector<2x128xf32> to vector<2x32xf32>
    %98 = vector.extract_strided_slice %94 {offsets = [0, 96], sizes = [2, 32], strides = [1, 1]} : vector<2x128xf32> to vector<2x32xf32>
    %99 = vector.extract_strided_slice %95 {offsets = [0, 64], sizes = [2, 32], strides = [1, 1]} : vector<2x128xf32> to vector<2x32xf32>
    %100 = arith.mulf %97, %83 : vector<2x32xf32>
    %101 = arith.mulf %96, %99 : vector<2x32xf32>
    %102 = arith.addf %100, %101 : vector<2x32xf32>
    %103 = math.tanh %102 : vector<2x32xf32>
    %104 = arith.mulf %98, %103 : vector<2x32xf32>
    %105 = vector.extract_strided_slice %6 {offsets = [0, 5, 0], sizes = [2, 1, 128], strides = [1, 1, 1]} : vector<2x8x128xf32> to vector<2x1x128xf32>
    %106 = vector.shape_cast %105 : vector<2x1x128xf32> to vector<2x128xf32>
    %cst_20 = arith.constant dense<0.000000e+00> : vector<2x128xf32>
    %107 = tpu.matmul %104, %7, %cst_20 {dimension_numbers = #tpu.dot_dimension_numbers<[1], [0], [0], [1], [0, 0, 1, 1], [], []>} : vector<2x32xf32>, vector<32x128xf32>, vector<2x128xf32> -> vector<2x128xf32>
    %108 = arith.addf %106, %107 : vector<2x128xf32>
    %109 = arith.negf %108 : vector<2x128xf32>
    %110 = math.exp %109 : vector<2x128xf32>
    %cst_21 = arith.constant 1.000000e+00 : f32
    %111 = vector.broadcast %cst_21 : f32 to vector<2x128xf32>
    %112 = arith.addf %111, %110 : vector<2x128xf32>
    %113 = arith.divf %111, %112 : vector<2x128xf32>
    %114 = math.tanh %108 : vector<2x128xf32>
    %115 = vector.extract_strided_slice %113 {offsets = [0, 0], sizes = [2, 32], strides = [1, 1]} : vector<2x128xf32> to vector<2x32xf32>
    %116 = vector.extract_strided_slice %113 {offsets = [0, 32], sizes = [2, 32], strides = [1, 1]} : vector<2x128xf32> to vector<2x32xf32>
    %117 = vector.extract_strided_slice %113 {offsets = [0, 96], sizes = [2, 32], strides = [1, 1]} : vector<2x128xf32> to vector<2x32xf32>
    %118 = vector.extract_strided_slice %114 {offsets = [0, 64], sizes = [2, 32], strides = [1, 1]} : vector<2x128xf32> to vector<2x32xf32>
    %119 = arith.mulf %116, %102 : vector<2x32xf32>
    %120 = arith.mulf %115, %118 : vector<2x32xf32>
    %121 = arith.addf %119, %120 : vector<2x32xf32>
    %122 = math.tanh %121 : vector<2x32xf32>
    %123 = arith.mulf %117, %122 : vector<2x32xf32>
    %124 = vector.extract_strided_slice %6 {offsets = [0, 6, 0], sizes = [2, 1, 128], strides = [1, 1, 1]} : vector<2x8x128xf32> to vector<2x1x128xf32>
    %125 = vector.shape_cast %124 : vector<2x1x128xf32> to vector<2x128xf32>
    %cst_22 = arith.constant dense<0.000000e+00> : vector<2x128xf32>
    %126 = tpu.matmul %123, %7, %cst_22 {dimension_numbers = #tpu.dot_dimension_numbers<[1], [0], [0], [1], [0, 0, 1, 1], [], []>} : vector<2x32xf32>, vector<32x128xf32>, vector<2x128xf32> -> vector<2x128xf32>
    %127 = arith.addf %125, %126 : vector<2x128xf32>
    %128 = arith.negf %127 : vector<2x128xf32>
    %129 = math.exp %128 : vector<2x128xf32>
    %cst_23 = arith.constant 1.000000e+00 : f32
    %130 = vector.broadcast %cst_23 : f32 to vector<2x128xf32>
    %131 = arith.addf %130, %129 : vector<2x128xf32>
    %132 = arith.divf %130, %131 : vector<2x128xf32>
    %133 = math.tanh %127 : vector<2x128xf32>
    %134 = vector.extract_strided_slice %132 {offsets = [0, 0], sizes = [2, 32], strides = [1, 1]} : vector<2x128xf32> to vector<2x32xf32>
    %135 = vector.extract_strided_slice %132 {offsets = [0, 32], sizes = [2, 32], strides = [1, 1]} : vector<2x128xf32> to vector<2x32xf32>
    %136 = vector.extract_strided_slice %132 {offsets = [0, 96], sizes = [2, 32], strides = [1, 1]} : vector<2x128xf32> to vector<2x32xf32>
    %137 = vector.extract_strided_slice %133 {offsets = [0, 64], sizes = [2, 32], strides = [1, 1]} : vector<2x128xf32> to vector<2x32xf32>
    %138 = arith.mulf %135, %121 : vector<2x32xf32>
    %139 = arith.mulf %134, %137 : vector<2x32xf32>
    %140 = arith.addf %138, %139 : vector<2x32xf32>
    %141 = math.tanh %140 : vector<2x32xf32>
    %142 = arith.mulf %136, %141 : vector<2x32xf32>
    %143 = vector.extract_strided_slice %6 {offsets = [0, 7, 0], sizes = [2, 1, 128], strides = [1, 1, 1]} : vector<2x8x128xf32> to vector<2x1x128xf32>
    %144 = vector.shape_cast %143 : vector<2x1x128xf32> to vector<2x128xf32>
    %cst_24 = arith.constant dense<0.000000e+00> : vector<2x128xf32>
    %145 = tpu.matmul %142, %7, %cst_24 {dimension_numbers = #tpu.dot_dimension_numbers<[1], [0], [0], [1], [0, 0, 1, 1], [], []>} : vector<2x32xf32>, vector<32x128xf32>, vector<2x128xf32> -> vector<2x128xf32>
    %146 = arith.addf %144, %145 : vector<2x128xf32>
    %147 = arith.negf %146 : vector<2x128xf32>
    %148 = math.exp %147 : vector<2x128xf32>
    %cst_25 = arith.constant 1.000000e+00 : f32
    %149 = vector.broadcast %cst_25 : f32 to vector<2x128xf32>
    %150 = arith.addf %149, %148 : vector<2x128xf32>
    %151 = arith.divf %149, %150 : vector<2x128xf32>
    %152 = math.tanh %146 : vector<2x128xf32>
    %153 = vector.extract_strided_slice %151 {offsets = [0, 0], sizes = [2, 32], strides = [1, 1]} : vector<2x128xf32> to vector<2x32xf32>
    %154 = vector.extract_strided_slice %151 {offsets = [0, 32], sizes = [2, 32], strides = [1, 1]} : vector<2x128xf32> to vector<2x32xf32>
    %155 = vector.extract_strided_slice %151 {offsets = [0, 96], sizes = [2, 32], strides = [1, 1]} : vector<2x128xf32> to vector<2x32xf32>
    %156 = vector.extract_strided_slice %152 {offsets = [0, 64], sizes = [2, 32], strides = [1, 1]} : vector<2x128xf32> to vector<2x32xf32>
    %157 = arith.mulf %154, %140 : vector<2x32xf32>
    %158 = arith.mulf %153, %156 : vector<2x32xf32>
    %159 = arith.addf %157, %158 : vector<2x32xf32>
    %160 = math.tanh %159 : vector<2x32xf32>
    %161 = arith.mulf %155, %160 : vector<2x32xf32>
    %162 = vector.shape_cast %28 : vector<2x32xf32> to vector<2x1x32xf32>
    %163 = vector.shape_cast %47 : vector<2x32xf32> to vector<2x1x32xf32>
    %164 = vector.shape_cast %66 : vector<2x32xf32> to vector<2x1x32xf32>
    %165 = vector.shape_cast %85 : vector<2x32xf32> to vector<2x1x32xf32>
    %166 = vector.shape_cast %104 : vector<2x32xf32> to vector<2x1x32xf32>
    %167 = vector.shape_cast %123 : vector<2x32xf32> to vector<2x1x32xf32>
    %168 = vector.shape_cast %142 : vector<2x32xf32> to vector<2x1x32xf32>
    %169 = vector.shape_cast %161 : vector<2x32xf32> to vector<2x1x32xf32>
    %170 = tpu.concatenate %162, %163, %164, %165, %166, %167, %168, %169 in 1 : vector<2x1x32xf32>, vector<2x1x32xf32>, vector<2x1x32xf32>, vector<2x1x32xf32>, vector<2x1x32xf32>, vector<2x1x32xf32>, vector<2x1x32xf32>, vector<2x1x32xf32> -> vector<2x8x32xf32>
    %c0_26 = arith.constant 0 : index
    %c0_27 = arith.constant 0 : index
    %171 = vector.load %arg4[%c0_26, %c0_27] : memref<32x32xf32, #tpu.memory_space<vmem>>, vector<32x32xf32>
    "tpu.trace_start"() <{level = 10 : i32, message = "bth,hk->btk"}> : () -> ()
    %cst_28 = arith.constant dense<0.000000e+00> : vector<2x8x32xf32>
    %172 = tpu.matmul %170, %171, %cst_28 {dimension_numbers = #tpu.dot_dimension_numbers<[2], [0], [0, 1], [1], [0, 0, 0, 1, 1, 1], [], []>} : vector<2x8x32xf32>, vector<32x32xf32>, vector<2x8x32xf32> -> vector<2x8x32xf32>
    "tpu.trace_stop"() : () -> ()
    %c0_29 = arith.constant 0 : index
    %c0_30 = arith.constant 0 : index
    %173 = vector.load %arg7[%c0_29, %c0_30] : memref<1x32xf32, #tpu.memory_space<vmem>>, vector<1x32xf32>
    %174 = vector.shape_cast %173 : vector<1x32xf32> to vector<1x1x32xf32>
    %175 = vector.broadcast %174 : vector<1x1x32xf32> to vector<2x8x32xf32>
    %176 = arith.addf %172, %175 : vector<2x8x32xf32>
    %c0_31 = arith.constant 0 : index
    %c0_32 = arith.constant 0 : index
    %177 = vector.load %arg5[%c0_31, %c0_32] : memref<32x32xf32, #tpu.memory_space<vmem>>, vector<32x32xf32>
    "tpu.trace_start"() <{level = 10 : i32, message = "bth,hk->btk"}> : () -> ()
    %cst_33 = arith.constant dense<0.000000e+00> : vector<2x8x32xf32>
    %178 = tpu.matmul %170, %177, %cst_33 {dimension_numbers = #tpu.dot_dimension_numbers<[2], [0], [0, 1], [1], [0, 0, 0, 1, 1, 1], [], []>} : vector<2x8x32xf32>, vector<32x32xf32>, vector<2x8x32xf32> -> vector<2x8x32xf32>
    "tpu.trace_stop"() : () -> ()
    %c0_34 = arith.constant 0 : index
    %c0_35 = arith.constant 0 : index
    %179 = vector.load %arg8[%c0_34, %c0_35] : memref<1x32xf32, #tpu.memory_space<vmem>>, vector<1x32xf32>
    %180 = vector.shape_cast %179 : vector<1x32xf32> to vector<1x1x32xf32>
    %181 = vector.broadcast %180 : vector<1x1x32xf32> to vector<2x8x32xf32>
    %182 = arith.addf %178, %181 : vector<2x8x32xf32>
    %c0_36 = arith.constant 0 : index
    %c0_37 = arith.constant 0 : index
    %183 = vector.load %arg6[%c0_36, %c0_37] : memref<32x32xf32, #tpu.memory_space<vmem>>, vector<32x32xf32>
    "tpu.trace_start"() <{level = 10 : i32, message = "bth,hk->btk"}> : () -> ()
    %cst_38 = arith.constant dense<0.000000e+00> : vector<2x8x32xf32>
    %184 = tpu.matmul %170, %183, %cst_38 {dimension_numbers = #tpu.dot_dimension_numbers<[2], [0], [0, 1], [1], [0, 0, 0, 1, 1, 1], [], []>} : vector<2x8x32xf32>, vector<32x32xf32>, vector<2x8x32xf32> -> vector<2x8x32xf32>
    "tpu.trace_stop"() : () -> ()
    %c0_39 = arith.constant 0 : index
    %c0_40 = arith.constant 0 : index
    %185 = vector.load %arg9[%c0_39, %c0_40] : memref<1x32xf32, #tpu.memory_space<vmem>>, vector<1x32xf32>
    %186 = vector.shape_cast %185 : vector<1x32xf32> to vector<1x1x32xf32>
    %187 = vector.broadcast %186 : vector<1x1x32xf32> to vector<2x8x32xf32>
    %188 = arith.addf %184, %187 : vector<2x8x32xf32>
    %cst_41 = arith.constant 5.000000e-01 : f32
    %189 = vector.broadcast %cst_41 : f32 to vector<2x8x32xf32>
    %190 = arith.mulf %176, %189 : vector<2x8x32xf32>
    %191 = vector.extract_strided_slice %190 {offsets = [0, 0, 0], sizes = [2, 8, 4], strides = [1, 1, 1]} : vector<2x8x32xf32> to vector<2x8x4xf32>
    %192 = vector.extract_strided_slice %190 {offsets = [0, 0, 4], sizes = [2, 8, 4], strides = [1, 1, 1]} : vector<2x8x32xf32> to vector<2x8x4xf32>
    %193 = vector.extract_strided_slice %190 {offsets = [0, 0, 8], sizes = [2, 8, 4], strides = [1, 1, 1]} : vector<2x8x32xf32> to vector<2x8x4xf32>
    %194 = vector.extract_strided_slice %190 {offsets = [0, 0, 12], sizes = [2, 8, 4], strides = [1, 1, 1]} : vector<2x8x32xf32> to vector<2x8x4xf32>
    %195 = vector.extract_strided_slice %190 {offsets = [0, 0, 16], sizes = [2, 8, 4], strides = [1, 1, 1]} : vector<2x8x32xf32> to vector<2x8x4xf32>
    %196 = vector.extract_strided_slice %190 {offsets = [0, 0, 20], sizes = [2, 8, 4], strides = [1, 1, 1]} : vector<2x8x32xf32> to vector<2x8x4xf32>
    %197 = vector.extract_strided_slice %190 {offsets = [0, 0, 24], sizes = [2, 8, 4], strides = [1, 1, 1]} : vector<2x8x32xf32> to vector<2x8x4xf32>
    %198 = vector.extract_strided_slice %190 {offsets = [0, 0, 28], sizes = [2, 8, 4], strides = [1, 1, 1]} : vector<2x8x32xf32> to vector<2x8x4xf32>
    %199 = vector.shape_cast %191 : vector<2x8x4xf32> to vector<1x2x8x4xf32>
    %200 = vector.shape_cast %192 : vector<2x8x4xf32> to vector<1x2x8x4xf32>
    %201 = vector.shape_cast %193 : vector<2x8x4xf32> to vector<1x2x8x4xf32>
    %202 = vector.shape_cast %194 : vector<2x8x4xf32> to vector<1x2x8x4xf32>
    %203 = vector.shape_cast %195 : vector<2x8x4xf32> to vector<1x2x8x4xf32>
    %204 = vector.shape_cast %196 : vector<2x8x4xf32> to vector<1x2x8x4xf32>
    %205 = vector.shape_cast %197 : vector<2x8x4xf32> to vector<1x2x8x4xf32>
    %206 = vector.shape_cast %198 : vector<2x8x4xf32> to vector<1x2x8x4xf32>
    %207 = tpu.concatenate %199, %200, %201, %202, %203, %204, %205, %206 in 0 : vector<1x2x8x4xf32>, vector<1x2x8x4xf32>, vector<1x2x8x4xf32>, vector<1x2x8x4xf32>, vector<1x2x8x4xf32>, vector<1x2x8x4xf32>, vector<1x2x8x4xf32>, vector<1x2x8x4xf32> -> vector<8x2x8x4xf32>
    %208 = vector.shape_cast %207 : vector<8x2x8x4xf32> to vector<16x8x4xf32>
    %209 = vector.extract_strided_slice %182 {offsets = [0, 0, 0], sizes = [2, 8, 4], strides = [1, 1, 1]} : vector<2x8x32xf32> to vector<2x8x4xf32>
    %210 = vector.extract_strided_slice %182 {offsets = [0, 0, 4], sizes = [2, 8, 4], strides = [1, 1, 1]} : vector<2x8x32xf32> to vector<2x8x4xf32>
    %211 = vector.extract_strided_slice %182 {offsets = [0, 0, 8], sizes = [2, 8, 4], strides = [1, 1, 1]} : vector<2x8x32xf32> to vector<2x8x4xf32>
    %212 = vector.extract_strided_slice %182 {offsets = [0, 0, 12], sizes = [2, 8, 4], strides = [1, 1, 1]} : vector<2x8x32xf32> to vector<2x8x4xf32>
    %213 = vector.extract_strided_slice %182 {offsets = [0, 0, 16], sizes = [2, 8, 4], strides = [1, 1, 1]} : vector<2x8x32xf32> to vector<2x8x4xf32>
    %214 = vector.extract_strided_slice %182 {offsets = [0, 0, 20], sizes = [2, 8, 4], strides = [1, 1, 1]} : vector<2x8x32xf32> to vector<2x8x4xf32>
    %215 = vector.extract_strided_slice %182 {offsets = [0, 0, 24], sizes = [2, 8, 4], strides = [1, 1, 1]} : vector<2x8x32xf32> to vector<2x8x4xf32>
    %216 = vector.extract_strided_slice %182 {offsets = [0, 0, 28], sizes = [2, 8, 4], strides = [1, 1, 1]} : vector<2x8x32xf32> to vector<2x8x4xf32>
    %217 = vector.shape_cast %209 : vector<2x8x4xf32> to vector<1x2x8x4xf32>
    %218 = vector.shape_cast %210 : vector<2x8x4xf32> to vector<1x2x8x4xf32>
    %219 = vector.shape_cast %211 : vector<2x8x4xf32> to vector<1x2x8x4xf32>
    %220 = vector.shape_cast %212 : vector<2x8x4xf32> to vector<1x2x8x4xf32>
    %221 = vector.shape_cast %213 : vector<2x8x4xf32> to vector<1x2x8x4xf32>
    %222 = vector.shape_cast %214 : vector<2x8x4xf32> to vector<1x2x8x4xf32>
    %223 = vector.shape_cast %215 : vector<2x8x4xf32> to vector<1x2x8x4xf32>
    %224 = vector.shape_cast %216 : vector<2x8x4xf32> to vector<1x2x8x4xf32>
    %225 = tpu.concatenate %217, %218, %219, %220, %221, %222, %223, %224 in 0 : vector<1x2x8x4xf32>, vector<1x2x8x4xf32>, vector<1x2x8x4xf32>, vector<1x2x8x4xf32>, vector<1x2x8x4xf32>, vector<1x2x8x4xf32>, vector<1x2x8x4xf32>, vector<1x2x8x4xf32> -> vector<8x2x8x4xf32>
    %226 = vector.shape_cast %225 : vector<8x2x8x4xf32> to vector<16x8x4xf32>
    %227 = vector.extract_strided_slice %188 {offsets = [0, 0, 0], sizes = [2, 8, 4], strides = [1, 1, 1]} : vector<2x8x32xf32> to vector<2x8x4xf32>
    %228 = vector.extract_strided_slice %188 {offsets = [0, 0, 4], sizes = [2, 8, 4], strides = [1, 1, 1]} : vector<2x8x32xf32> to vector<2x8x4xf32>
    %229 = vector.extract_strided_slice %188 {offsets = [0, 0, 8], sizes = [2, 8, 4], strides = [1, 1, 1]} : vector<2x8x32xf32> to vector<2x8x4xf32>
    %230 = vector.extract_strided_slice %188 {offsets = [0, 0, 12], sizes = [2, 8, 4], strides = [1, 1, 1]} : vector<2x8x32xf32> to vector<2x8x4xf32>
    %231 = vector.extract_strided_slice %188 {offsets = [0, 0, 16], sizes = [2, 8, 4], strides = [1, 1, 1]} : vector<2x8x32xf32> to vector<2x8x4xf32>
    %232 = vector.extract_strided_slice %188 {offsets = [0, 0, 20], sizes = [2, 8, 4], strides = [1, 1, 1]} : vector<2x8x32xf32> to vector<2x8x4xf32>
    %233 = vector.extract_strided_slice %188 {offsets = [0, 0, 24], sizes = [2, 8, 4], strides = [1, 1, 1]} : vector<2x8x32xf32> to vector<2x8x4xf32>
    %234 = vector.extract_strided_slice %188 {offsets = [0, 0, 28], sizes = [2, 8, 4], strides = [1, 1, 1]} : vector<2x8x32xf32> to vector<2x8x4xf32>
    %235 = vector.shape_cast %227 : vector<2x8x4xf32> to vector<1x2x8x4xf32>
    %236 = vector.shape_cast %228 : vector<2x8x4xf32> to vector<1x2x8x4xf32>
    %237 = vector.shape_cast %229 : vector<2x8x4xf32> to vector<1x2x8x4xf32>
    %238 = vector.shape_cast %230 : vector<2x8x4xf32> to vector<1x2x8x4xf32>
    %239 = vector.shape_cast %231 : vector<2x8x4xf32> to vector<1x2x8x4xf32>
    %240 = vector.shape_cast %232 : vector<2x8x4xf32> to vector<1x2x8x4xf32>
    %241 = vector.shape_cast %233 : vector<2x8x4xf32> to vector<1x2x8x4xf32>
    %242 = vector.shape_cast %234 : vector<2x8x4xf32> to vector<1x2x8x4xf32>
    %243 = tpu.concatenate %235, %236, %237, %238, %239, %240, %241, %242 in 0 : vector<1x2x8x4xf32>, vector<1x2x8x4xf32>, vector<1x2x8x4xf32>, vector<1x2x8x4xf32>, vector<1x2x8x4xf32>, vector<1x2x8x4xf32>, vector<1x2x8x4xf32>, vector<1x2x8x4xf32> -> vector<8x2x8x4xf32>
    %244 = vector.shape_cast %243 : vector<8x2x8x4xf32> to vector<16x8x4xf32>
    "tpu.trace_start"() <{level = 10 : i32, message = "nqd,nkd->nqk"}> : () -> ()
    %cst_42 = arith.constant dense<0.000000e+00> : vector<16x8x8xf32>
    %245 = tpu.matmul %208, %226, %cst_42 {dimension_numbers = #tpu.dot_dimension_numbers<[2], [2], [1], [1], [0, 0, 0, 1, 1, 1], [0], [0]>} : vector<16x8x4xf32>, vector<16x8x4xf32>, vector<16x8x8xf32> -> vector<16x8x8xf32>
    "tpu.trace_stop"() : () -> ()
    %cst_43 = arith.constant dense<0xFF800000> : vector<16x8xf32>
    %246 = vector.multi_reduction <maximumf>, %245, %cst_43 [2] : vector<16x8x8xf32> to vector<16x8xf32>
    %247 = vector.shape_cast %246 : vector<16x8xf32> to vector<16x8x1xf32>
    %248 = vector.broadcast %247 : vector<16x8x1xf32> to vector<16x8x8xf32>
    %249 = arith.subf %245, %248 : vector<16x8x8xf32>
    %250 = math.exp %249 : vector<16x8x8xf32>
    %cst_44 = arith.constant dense<0.000000e+00> : vector<16x8xf32>
    %251 = vector.multi_reduction <add>, %250, %cst_44 [2] : vector<16x8x8xf32> to vector<16x8xf32>
    %252 = vector.shape_cast %251 : vector<16x8xf32> to vector<16x8x1xf32>
    %253 = tpu.reciprocal %252 {approx = true} : vector<16x8x1xf32> -> vector<16x8x1xf32>
    %254 = vector.broadcast %253 : vector<16x8x1xf32> to vector<16x8x8xf32>
    %255 = arith.mulf %250, %254 : vector<16x8x8xf32>
    "tpu.trace_start"() <{level = 10 : i32, message = "nqk,nkd->nqd"}> : () -> ()
    %cst_45 = arith.constant dense<0.000000e+00> : vector<16x8x4xf32>
    %256 = tpu.matmul %255, %244, %cst_45 {dimension_numbers = #tpu.dot_dimension_numbers<[2], [1], [1], [2], [0, 0, 0, 1, 1, 2], [0], [0]>} : vector<16x8x8xf32>, vector<16x8x4xf32>, vector<16x8x4xf32> -> vector<16x8x4xf32>
    "tpu.trace_stop"() : () -> ()
    %c0_46 = arith.constant 0 : index
    %c0_47 = arith.constant 0 : index
    %c0_48 = arith.constant 0 : index
    %257 = vector.load %arg10[%c0_46, %c0_47, %c0_48] : memref<16x4x32xf32, #tpu.memory_space<vmem>>, vector<16x4x32xf32>
    "tpu.trace_start"() <{level = 10 : i32, message = "nqd,ndh->nqh"}> : () -> ()
    %cst_49 = arith.constant dense<0.000000e+00> : vector<16x8x32xf32>
    %258 = tpu.matmul %256, %257, %cst_49 {dimension_numbers = #tpu.dot_dimension_numbers<[2], [1], [1], [2], [0, 0, 0, 1, 1, 2], [0], [0]>} : vector<16x8x4xf32>, vector<16x4x32xf32>, vector<16x8x32xf32> -> vector<16x8x32xf32>
    "tpu.trace_stop"() : () -> ()
    %259 = vector.extract_strided_slice %258 {offsets = [0, 0, 0], sizes = [2, 8, 32], strides = [1, 1, 1]} : vector<16x8x32xf32> to vector<2x8x32xf32>
    %260 = vector.extract_strided_slice %258 {offsets = [2, 0, 0], sizes = [2, 8, 32], strides = [1, 1, 1]} : vector<16x8x32xf32> to vector<2x8x32xf32>
    %261 = arith.addf %259, %260 : vector<2x8x32xf32>
    %262 = vector.extract_strided_slice %258 {offsets = [4, 0, 0], sizes = [2, 8, 32], strides = [1, 1, 1]} : vector<16x8x32xf32> to vector<2x8x32xf32>
    %263 = arith.addf %261, %262 : vector<2x8x32xf32>
    %264 = vector.extract_strided_slice %258 {offsets = [6, 0, 0], sizes = [2, 8, 32], strides = [1, 1, 1]} : vector<16x8x32xf32> to vector<2x8x32xf32>
    %265 = arith.addf %263, %264 : vector<2x8x32xf32>
    %266 = vector.extract_strided_slice %258 {offsets = [8, 0, 0], sizes = [2, 8, 32], strides = [1, 1, 1]} : vector<16x8x32xf32> to vector<2x8x32xf32>
    %267 = arith.addf %265, %266 : vector<2x8x32xf32>
    %268 = vector.extract_strided_slice %258 {offsets = [10, 0, 0], sizes = [2, 8, 32], strides = [1, 1, 1]} : vector<16x8x32xf32> to vector<2x8x32xf32>
    %269 = arith.addf %267, %268 : vector<2x8x32xf32>
    %270 = vector.extract_strided_slice %258 {offsets = [12, 0, 0], sizes = [2, 8, 32], strides = [1, 1, 1]} : vector<16x8x32xf32> to vector<2x8x32xf32>
    %271 = arith.addf %269, %270 : vector<2x8x32xf32>
    %272 = vector.extract_strided_slice %258 {offsets = [14, 0, 0], sizes = [2, 8, 32], strides = [1, 1, 1]} : vector<16x8x32xf32> to vector<2x8x32xf32>
    %273 = arith.addf %271, %272 : vector<2x8x32xf32>
    %c0_50 = arith.constant 0 : index
    %c0_51 = arith.constant 0 : index
    %274 = vector.load %arg11[%c0_50, %c0_51] : memref<1x32xf32, #tpu.memory_space<vmem>>, vector<1x32xf32>
    %275 = vector.shape_cast %274 : vector<1x32xf32> to vector<1x1x32xf32>
    %276 = vector.broadcast %275 : vector<1x1x32xf32> to vector<2x8x32xf32>
    %277 = arith.addf %273, %276 : vector<2x8x32xf32>
    %c0_52 = arith.constant 0 : index
    %c0_53 = arith.constant 0 : index
    %278 = vector.load %arg12[%c0_52, %c0_53] : memref<1x32xf32, #tpu.memory_space<vmem>>, vector<1x32xf32>
    %279 = vector.shape_cast %278 : vector<1x32xf32> to vector<1x1x32xf32>
    %280 = vector.broadcast %279 : vector<1x1x32xf32> to vector<2x8x32xf32>
    %281 = arith.mulf %277, %280 : vector<2x8x32xf32>
    %cst_54 = arith.constant dense<0.000000e+00> : vector<2x8xf32>
    %282 = vector.multi_reduction <add>, %281, %cst_54 [2] : vector<2x8x32xf32> to vector<2x8xf32>
    %c0_55 = arith.constant 0 : index
    %c0_56 = arith.constant 0 : index
    %283 = vector.load %arg13[%c0_55, %c0_56] : memref<1x1xf32, #tpu.memory_space<vmem>>, vector<1x1xf32>
    %284 = vector.broadcast %283 : vector<1x1xf32> to vector<2x8xf32>
    %285 = arith.addf %282, %284 : vector<2x8xf32>
    %c0_57 = arith.constant 0 : index
    %c0_58 = arith.constant 0 : index
    %286 = vector.load %arg14[%c0_57, %c0_58] : memref<2x8xf32, #tpu.memory_space<vmem>>, vector<2x8xf32>
    tpu.vector_store %arg14[%c0_57, %c0_58], %285 {strides = array<i32>} : memref<2x8xf32, #tpu.memory_space<vmem>>, vector<2x8xf32>,
    return
  }
}

</mosaic_0001>

<bundles_post_ra>
// kernel: tpu_custom_call.1
= control target key start
LH: loop header
LB: loop body
LE: loop exit
PB: predicated region body
PF: predicated region fallthrough
CT: control target
= control target key end

     0   :  { %s3974_s0 = inlined_call_operand.hbm [shape: f32[2,8,8], index: 0, kind: input, shape index: {}]   ;;  %s3975_s1 = inlined_call_operand.hbm [shape: f32[8,128], index: 1, kind: input, shape index: {}]   ;;  %s3976_s2 = inlined_call_operand.hbm [shape: f32[32,128], index: 2, kind: input, shape index: {}]   ;;  %s3977_s3 = inlined_call_operand.vmem [shape: f32[1,128], index: 3, kind: input, shape index: {}]   ;;  %s3978_s4 = inlined_call_operand.hbm [shape: f32[32,32], index: 4, kind: input, shape index: {}]   ;;  %s3979_s5 = inlined_call_operand.hbm [shape: f32[32,32], index: 5, kind: input, shape index: {}]   ;;  %s3980_s6 = inlined_call_operand.hbm [shape: f32[32,32], index: 6, kind: input, shape index: {}]   ;;  %s3981_s7 = inlined_call_operand.vmem [shape: f32[1,32], index: 7, kind: input, shape index: {}]   ;;  %s3982_s8 = inlined_call_operand.vmem [shape: f32[1,32], index: 8, kind: input, shape index: {}]   ;;  %s3983_s9 = inlined_call_operand.vmem [shape: f32[1,32], index: 9, kind: input, shape index: {}]   ;;  %s3984_s10 = inlined_call_operand.hbm [shape: f32[16,4,32], index: 10, kind: input, shape index: {}]   ;;  %s3985_s11 = inlined_call_operand.vmem [shape: f32[1,32], index: 11, kind: input, shape index: {}]   ;;  %s3986_s12 = inlined_call_operand.vmem [shape: f32[1,32], index: 12, kind: input, shape index: {}]   ;;  %s3987_s13 = inlined_call_operand.<no memory space> [shape: f32[1,1], index: 13, kind: input, shape index: {}]   ;;  %s3988_s14 = inlined_call_operand.hbm [shape: f32[2,8], index: 14, kind: output, shape index: {}]  }
   0x1   :  { %v19_v0 = vstv %s3987_s13 }
   0x2   :  { %20 = vst [vmem:[#allocation2] sm:$0x1] %v19_v0 }
   0x3   :  { %21 = vsyncpa [#allocation4], 0 }
   0x4   :  { %22 = vsyncpa [#allocation7], 0 }
   0x5   :  { %23 = vsyncpa [#allocation10], 0 }
   0x6   :  { %24 = vsyncpa [#allocation13], 0  ;;  %s44_s17 = sshll.u32 %s3975_s1, 4  ;;  %s45_s17 = int_to_ptr.hbm [resolvable:$true] %s44_s17 }
   0x7   :  { %25 = vsyncpa [#allocation5], 0  ;;  %s3345_s18 = smov [#allocation6]   ;;  %s69_s22 = sshll.u32 %s3978_s4, 4  ;;  %s70_s22 = int_to_ptr.hbm [resolvable:$true] %s69_s22 }
   0x8   :  { %s46_s19 = sshll.u32 %s3345_s18, 4  ;;  %s3346_s13 = smov [#allocation9]   ;;  %s47_s19 = int_to_ptr.vmem [resolvable:$true] %s46_s19 }
   0x9   :  { %49 = dma.hbm_to_vmem [thread:$0]  %s45_s17, 128, %s47_s19, [#allocation7]  }
   0xa   :  { %s71_s23 = sshll.u32 %s3346_s13, 4  ;;  %s95_s26 = sshll.u32 %s3980_s6, 4  ;;  %s72_s23 = int_to_ptr.vmem [resolvable:$true] %s71_s23  ;;  %s96_s26 = int_to_ptr.hbm [resolvable:$true] %s95_s26 }
   0xb   :  { %s3347_s1 = smov 128   ;;  %s3348_s27 = smov 8  }
   0xc   :  { %77 = dma.hbm_to_vmem [thread:$0]  %s70_s22, 512, %s72_s23, [#allocation10], %s3347_s1, %s3347_s1, %s3348_s27  }
   0xd   :  { %s30_s30 = sshll.u32 %s3974_s0, 4  ;;  %s3349_s15 = smov [#allocation12]   ;;  %s31_s30 = int_to_ptr.hbm [resolvable:$true] %s30_s30 }
   0xe   :  { %s97_s16 = sshll.u32 %s3349_s15, 4  ;;  %s3350_s4 = smov [#allocation3]   ;;  %s98_s16 = int_to_ptr.vmem [resolvable:$true] %s97_s16 }
   0xf   :  { %103 = dma.hbm_to_vmem [thread:$0]  %s96_s26, 512, %s98_s16, [#allocation13], %s3347_s1, %s3347_s1, %s3348_s27  }
  0x10   :  { %s32_s17 = sshll.u32 %s3350_s4, 4  ;;  %s54_s6 = sshll.u32 %s3976_s2, 4  ;;  %s33_s17 = int_to_ptr.vmem [resolvable:$true] %s32_s17  ;;  %s55_s6 = int_to_ptr.hbm [resolvable:$true] %s54_s6 }
  0x11   :  { %38 = dma.hbm_to_vmem [thread:$0]  %s31_s30, 256, %s33_s17, [#allocation4], %s3347_s1, %s3347_s1, %s3348_s27  }
  0x12   :  { %s82_s22 = sshll.u32 %s3979_s5, 4  ;;  %s3351_s13 = smov [#allocation8]   ;;  %s83_s22 = int_to_ptr.hbm [resolvable:$true] %s82_s22 }
  0x13   :  { %s56_s0 = sshll.u32 %s3351_s13, 4  ;;  %s3352_s23 = smov [#allocation11]   ;;  %s57_s0 = int_to_ptr.vmem [resolvable:$true] %s56_s0 }
  0x14   :  { %62 = dma.hbm_to_vmem [thread:$0]  %s55_s6, 512, %s57_s0, [#allocation7], %s3347_s1, %s3347_s1, %s3348_s27  }
  0x15   :  { %s84_s24 = sshll.u32 %s3352_s23, 4  ;;  %s114_s28 = sshll.u32 %s3984_s10, 4  ;;  %s85_s24 = int_to_ptr.vmem [resolvable:$true] %s84_s24  ;;  %s115_s28 = int_to_ptr.hbm [resolvable:$true] %s114_s28 }
  0x16   :  { %90 = dma.hbm_to_vmem [thread:$0]  %s83_s22, 512, %s85_s24, [#allocation10], %s3347_s1, %s3347_s1, %s3348_s27  }
  0x17   :  { %s3353_s2 = smov [#allocation14]   ;;  %s3354_s30 = smov 64  }
  0x18   :  { %s116_s29 = sshll.u32 %s3353_s2, 4  ;;  %s3355_s15 = smov 4   ;;  %s117_s29 = int_to_ptr.vmem [resolvable:$true] %s116_s29 }
  0x19   :  { %122 = dma.hbm_to_vmem [thread:$0]  %s115_s28, 1024, %s117_s29, [#allocation13], %s3354_s30, %s3354_s30, %s3355_s15  }
  0x1a   :  { %3335 = dma.done.wait [#allocation4], 256  }
  0x1b   :  { %3336 = vsyncadd [#allocation4], 4294967040 }
  0x1c   :  { %3337 = dma.done.wait [#allocation7], 640  }
  0x1d   :  { %3338 = vsyncadd [#allocation7], 4294966656 }
  0x1e   :  { %3339 = dma.done.wait [#allocation10], 1024  }
  0x1f   :  { %3340 = vsyncadd [#allocation10], 4294966272 }
  0x20   :  { %3341 = dma.done.wait [#allocation13], 1536  }
  0x21   :  { %3342 = vsyncadd [#allocation13], 4294965760  ;;  %vm164_vm0 = vcmask 64512   ;;  %v159_v1 = vld [vmem:[#allocation6] sm:$0xff]  ;;  %v157_v3 = vld [vmem:[#allocation3] sm:$0xff]  ;;  %v3356_v8 = vmov 0.0  }
  0x22   :  { %v197_v2 = vld [vmem:[#allocation8 + $0x18] sm:$0xff]  ;;  %186 = vmatpush.msra.mxu0 %v159_v1  ;;  %v196_v4 = vld [vmem:[#allocation8 + $0x10] sm:$0xff]  ;;  %v195_v5 = vld [vmem:[#allocation8 + $0x8] sm:$0xff]  ;;  %vm305_vm9 = vcmask 1041409   ;;  %vm198_vm10 = vcmask 261120   ;;  %s3358_s17 = smov 108  }
  0x23   :  { %214 = vmatpush.msra.mxu1 %v197_v2  ;;  %2774 = vmatmul.msk.f32.vlgmr.msra.gmra.mxu0 %vm164_vm0, %v157_v3  ;;  %v194_v6 = vld [vmem:[#allocation8] sm:$0xff]  ;;  %v158_v7 = vld [vmem:[#allocation3 + $0x8] sm:$0xff]  ;;  %s3359_s18 = smov 116   ;;  %s3360_s19 = smov 124  }
  0x24   :  { %323 = vmatpush.msra.mxu2 %v197_v2  ;;  %437 = vmatpush.msra.mxu3 %v197_v2  ;;  %v2944_v11 = vld [vmem:[%s3977_s3] ss:$0 sm:$0xff]  ;;  %s3357_s3 = smov 32   ;;  %s3363_s6 = smov 112  }
  0x25   :  { %215 = vmatpush.msra.mxu1 %v196_v4  ;;  %901 = vmatpush.msrb.mxu0 %v197_v2  ;;  %s3364_s20 = smov 104   ;;  %s2761_s26 = sshll.u32 %s3988_s14, 4  ;;  %s2762_s26 = int_to_ptr.hbm [resolvable:$true] %s2761_s26 }
  0x26   :  { %324 = vmatpush.msra.mxu2 %v196_v4  ;;  %438 = vmatpush.msra.mxu3 %v196_v4 }
  0x27   :  { %216 = vmatpush.msra.mxu1 %v195_v5  ;;  %902 = vmatpush.msrb.mxu0 %v196_v4 }
  0x28   :  { %325 = vmatpush.msra.mxu2 %v195_v5  ;;  %439 = vmatpush.msra.mxu3 %v195_v5 }
  0x29   :  { %217 = vmatpush.msra.mxu1 %v194_v6  ;;  %903 = vmatpush.msrb.mxu0 %v195_v5 }
  0x2a   :  { %218 = vmatmul.f32.vlgmr.msra.gmra.mxu1 %v3356_v8  ;;  %326 = vmatpush.msra.mxu2 %v194_v6 }
  0x2b   :  { %440 = vmatpush.msra.mxu3 %v194_v6  ;;  %553 = vmatpush.msrb.mxu1 %v197_v2 }
  0x2c   :  { %2775 = vmatmul.msk.f32.gmra.mxu0 %vm164_vm0, %v158_v7  ;;  %669 = vmatpush.msrb.mxu2 %v197_v2 }
  0x2d   :  { %554 = vmatpush.msrb.mxu1 %v196_v4  ;;  %785 = vmatpush.msrb.mxu3 %v197_v2 }
  0x2e   :  { %670 = vmatpush.msrb.mxu2 %v196_v4  ;;  %904 = vmatpush.msrb.mxu0 %v194_v6 }
  0x2f   :  { %555 = vmatpush.msrb.mxu1 %v195_v5  ;;  %786 = vmatpush.msrb.mxu3 %v196_v4 }
  0x30   :  { %671 = vmatpush.msrb.mxu2 %v195_v5 }
  0x31   :  { %556 = vmatpush.msrb.mxu1 %v194_v6  ;;  %787 = vmatpush.msrb.mxu3 %v195_v5 }
  0x32   :  { %672 = vmatpush.msrb.mxu2 %v194_v6 }
  0x33   :  { %1017 = vmatpush.msra.mxu1 %v197_v2  ;;  %788 = vmatpush.msrb.mxu3 %v194_v6 }
  0x35   :  { %1018 = vmatpush.msra.mxu1 %v196_v4 }
  0x37   :  { %1019 = vmatpush.msra.mxu1 %v195_v5 }
  0x39   :  { %1020 = vmatpush.msra.mxu1 %v194_v6 }
  0xa0   :  { %v188_v9 = vpop.f32.mrf.mxu0 }
  0xa1   :  { %v3476_v16 = vadd.f32 %v2944_v11, %v188_v9 }
  0xa7   :  { %v219_v10 = vpop.f32.mrf.mxu1 }
  0xa8   :  { %v223_v12 = vrot.slane %v219_v10, 1  ;;  %v226_v17 = vadd.f32 %v219_v10, %v3476_v16 }
  0xa9   :  { %v191_v13 = vpop.f32.mrf.mxu0 }
  0xaa   :  { %v3473_v14 = vadd.f32 %v2944_v11, %v191_v13  ;;  %v2776_v21 = vmul.f32 -1.442695, %v226_v17 }
  0xac   :  { %v227_v15 = vadd.f32 %v223_v12, %v3473_v14 }
  0xae   :  { %2951 = vtanh.f32 %v227_v15  ;;  %v2777_v20 = vmul.f32 -1.442695, %v227_v15 }
  0xaf   :  { %2953 = vtanh.f32 %v226_v17 }
  0xb0   :  { %2955 = vpow2.f32 %v2777_v20 }
  0xb1   :  { %2957 = vpow2.f32 %v2776_v21 }
  0xb4   :  { %v2952_v18 = vpop.eup %2951 }
  0xb5   :  { %274 = vrot.lane.b32.xlu0 %v2952_v18, %s3354_s30  ;;  %v2954_v19 = vpop.eup %2953 }
  0xb6   :  { %v2956_v22 = vpop.eup %2955 }
  0xb7   :  { %v235_v23 = vadd.f32 1.0, %v2956_v22  ;;  %v2958_v24 = vpop.eup %2957 }
  0xb8   :  { %v234_v25 = vadd.f32 1.0, %v2958_v24 }
  0xb9   :  { %2959 = vrcp.f32 %v235_v23  ;;  %v262_v34 = vand.u32 2147483648, %v235_v23  ;;  %vm256_vm2 = vweird.f32 %v235_v23  ;;  %v260_v35 = vand.u32 2147483647, %v235_v23 }
  0xba   :  { %2961 = vrcp.f32 %v234_v25  ;;  %v247_v43 = vand.u32 2147483648, %v234_v25  ;;  %vm241_vm6 = vweird.f32 %v234_v25  ;;  %v245_v44 = vand.u32 2147483647, %v234_v25 }
  0xbb   :  { %v263_v38 = vor.u32 1.1754944e-38, %v262_v34  ;;  %vm261_vm4 = vcmp.eq.f32.partialorder %v260_v35, 8.507059e+37 }
  0xbc   :  { %v248_v46 = vor.u32 1.1754944e-38, %v247_v43  ;;  %vm246_vm8 = vcmp.eq.f32.partialorder %v245_v44, 8.507059e+37 }
  0xbd   :  { %272 = vrot.lane.b32.xlu0 %v2954_v19, %s3354_s30 }
  0xbf   :  { %v2960_v26 = vpop.eup %2959 }
  0xc0   :  { %v252_v27 = vmul.f32 %v2960_v26, %v235_v23  ;;  %v2962_v29 = vpop.eup %2961  ;;  %vm257_vm1 = vweird.f32 %v2960_v26 }
  0xc1   :  { %v237_v31 = vmul.f32 %v2962_v29, %v234_v25  ;;  %vm258_vm3 = vmor %vm256_vm2, %vm257_vm1  ;;  %vm242_vm5 = vweird.f32 %v2962_v29 }
  0xc2   :  { %v253_v28 = vsub.f32 1.0, %v252_v27  ;;  %vm243_vm7 = vmor %vm241_vm6, %vm242_vm5 }
  0xc3   :  { %v238_v33 = vsub.f32 1.0, %v237_v31 }
  0xc4   :  { %v254_v30 = vmul.f32 %v2960_v26, %v253_v28 }
  0xc5   :  { %v239_v37 = vmul.f32 %v2962_v29, %v238_v33 }
  0xc6   :  { %v255_v32 = vadd.f32 %v2960_v26, %v254_v30 }
  0xc7   :  { %v240_v42 = vadd.f32 %v2962_v29, %v239_v37 }
  0xc8   :  { %v259_v36 = vsel %vm258_vm3, %v2960_v26, %v255_v32 }
  0xc9   :  { %v264_v40 = vsel %vm261_vm4, %v263_v38, %v259_v36  ;;  %v244_v45 = vsel %vm243_vm7, %v2962_v29, %v240_v42 }
  0xca   :  { %v249_v48 = vsel %vm246_vm8, %v248_v46, %v244_v45  ;;  %v269_v50 = vmul.f32 0.0, %v264_v40 }
  0xcb   :  { %v268_v53 = vmul.f32 0.0, %v249_v48 }
 0x127   :  { %v275_v39 = vpop.permute.xlu0 %274 }
 0x128   :  { %v279_v41 = vmul.f32 %v275_v39, %v264_v40 }
 0x12a   :  { %284 = vrot.lane.b32.xlu1 %v279_v41, %s3357_s3 }
 0x12f   :  { %v273_v47 = vpop.permute.xlu0 %272 }
 0x130   :  { %v278_v49 = vmul.f32 %v273_v47, %v249_v48 }
 0x132   :  { %282 = vrot.lane.b32.xlu1 %v278_v49, %s3357_s3 }
 0x19c   :  { %v285_v51 = vpop.permute.xlu1 %284 }
 0x19d   :  { %v3483_v52 = vadd.f32 %v285_v51, %v269_v50 }
 0x19f   :  { %2963 = vtanh.f32 %v3483_v52  ;;  %v380_v39 = vrot.slane %v3483_v52, 7 }
 0x1a4   :  { %v283_v54 = vpop.permute.xlu1 %282 }
 0x1a5   :  { %v2964_v55 = vpop.eup %2963  ;;  %v3486_v56 = vadd.f32 %v283_v54, %v268_v53 }
 0x1a6   :  { %296 = vrot.lane.b32.xlu2 %v2964_v55, %s3354_s30 }
 0x1a7   :  { %2965 = vtanh.f32 %v3486_v56  ;;  %v379_v44 = vrot.slane %v3486_v56, 7 }
 0x1ad   :  { %v2966_v57 = vpop.eup %2965 }
 0x1ae   :  { %294 = vrot.lane.b32.xlu2 %v2966_v57, %s3354_s30 }
 0x200   :  { %v297_v58 = vpop.permute.xlu2 %296 }
 0x201   :  { %v3491_v59 = vmul.f32 %v297_v58, %v264_v40 }
 0x203   :  { %v304_v61 = vrot.slane %v3491_v59, 7 }
 0x208   :  { %v295_v60 = vpop.permute.xlu2 %294 }
 0x209   :  { %v3494_v62 = vmul.f32 %v295_v60, %v249_v48 }
 0x20b   :  { %v306_v63 = vsel %vm305_vm9, %v304_v61, %v3494_v62 }
 0x20c   :  { %307 = vrot.lane.b32.xlu0 %v306_v63, %s3357_s3 }
 0x27e   :  { %v308_v0 = vpop.permute.xlu0 %307 }
 0x27f   :  { %2778 = vmatmul.msk.f32.vlgmr.msra.gmra.mxu2 %vm198_vm10, %v308_v0 }
 0x302   :  { %v328_v1 = vpop.f32.mrf.mxu2 }
 0x303   :  { %v332_v2 = vrot.slane %v328_v1, 7  ;;  %v336_v3 = vadd.f32 %v328_v1, %v3473_v14 }
 0x305   :  { %v335_v4 = vadd.f32 %v332_v2, %v3476_v16  ;;  %2967 = vtanh.f32 %v336_v3  ;;  %v2780_v7 = vmul.f32 -1.442695, %v336_v3 }
 0x307   :  { %2969 = vtanh.f32 %v335_v4  ;;  %v2779_v12 = vmul.f32 -1.442695, %v335_v4 }
 0x308   :  { %2971 = vpow2.f32 %v2780_v7 }
 0x30b   :  { %v2968_v5 = vpop.eup %2967 }
 0x30c   :  { %389 = vrot.lane.b32.xlu2 %v2968_v5, %s3354_s30 }
 0x30d   :  { %v2970_v6 = vpop.eup %2969 }
 0x30e   :  { %387 = vrot.lane.b32.xlu1 %v2970_v6, %s3354_s30  ;;  %v2972_v8 = vpop.eup %2971 }
 0x30f   :  { %v344_v9 = vadd.f32 1.0, %v2972_v8 }
 0x311   :  { %2973 = vrcp.f32 %v344_v9  ;;  %v371_v19 = vand.u32 2147483648, %v344_v9  ;;  %vm365_vm12 = vweird.f32 %v344_v9  ;;  %v369_v21 = vand.u32 2147483647, %v344_v9 }
 0x312   :  { %2975 = vpow2.f32 %v2779_v12 }
 0x313   :  { %v372_v23 = vor.u32 1.1754944e-38, %v371_v19  ;;  %vm370_vm14 = vcmp.eq.f32.partialorder %v369_v21, 8.507059e+37 }
 0x317   :  { %v2974_v10 = vpop.eup %2973 }
 0x318   :  { %v361_v11 = vmul.f32 %v2974_v10, %v344_v9  ;;  %v2976_v17 = vpop.eup %2975  ;;  %vm366_vm11 = vweird.f32 %v2974_v10 }
 0x319   :  { %v343_v20 = vadd.f32 1.0, %v2976_v17  ;;  %vm367_vm13 = vmor %vm365_vm12, %vm366_vm11 }
 0x31a   :  { %v362_v13 = vsub.f32 1.0, %v361_v11 }
 0x31b   :  { %2977 = vrcp.f32 %v343_v20  ;;  %v356_v32 = vand.u32 2147483648, %v343_v20  ;;  %vm350_vm1 = vweird.f32 %v343_v20  ;;  %v354_v33 = vand.u32 2147483647, %v343_v20 }
 0x31c   :  { %v363_v15 = vmul.f32 %v2974_v10, %v362_v13 }
 0x31d   :  { %v357_v35 = vor.u32 1.1754944e-38, %v356_v32  ;;  %vm355_vm3 = vcmp.eq.f32.partialorder %v354_v33, 8.507059e+37 }
 0x31e   :  { %v364_v18 = vadd.f32 %v2974_v10, %v363_v15 }
 0x320   :  { %v368_v22 = vsel %vm367_vm13, %v2974_v10, %v364_v18 }
 0x321   :  { %v373_v25 = vsel %vm370_vm14, %v372_v23, %v368_v22  ;;  %v2978_v27 = vpop.eup %2977  ;;  %vm1112_vm14 = vcmask 1040384  }
 0x322   :  { %v346_v28 = vmul.f32 %v2978_v27, %v343_v20  ;;  %vm351_vm15 = vweird.f32 %v2978_v27  ;;  %v384_v40 = vmul.f32 %v380_v39, %v373_v25 }
 0x323   :  { %vm352_vm2 = vmor %vm350_vm1, %vm351_vm15  ;;  %vm1115_vm15 = vcmask 1041408  }
 0x324   :  { %v347_v29 = vsub.f32 1.0, %v346_v28 }
 0x326   :  { %v348_v30 = vmul.f32 %v2978_v27, %v347_v29 }
 0x328   :  { %v349_v31 = vadd.f32 %v2978_v27, %v348_v30 }
 0x32a   :  { %v353_v34 = vsel %vm352_vm2, %v2978_v27, %v349_v31 }
 0x32b   :  { %v358_v37 = vsel %vm355_vm3, %v357_v35, %v353_v34 }
 0x32c   :  { %v383_v45 = vmul.f32 %v379_v44, %v358_v37 }
 0x366   :  { %v390_v24 = vpop.permute.xlu2 %389 }
 0x367   :  { %v394_v26 = vmul.f32 %v390_v24, %v373_v25 }
 0x369   :  { %399 = vrot.lane.b32.xlu1 %v394_v26, %s3357_s3 }
 0x380   :  { %v388_v36 = vpop.permute.xlu1 %387 }
 0x381   :  { %v393_v38 = vmul.f32 %v388_v36, %v358_v37 }
 0x383   :  { %397 = vrot.lane.b32.xlu0 %v393_v38, %s3357_s3 }
 0x3db   :  { %v400_v41 = vpop.permute.xlu1 %399 }
 0x3dc   :  { %v3507_v42 = vadd.f32 %v400_v41, %v384_v40 }
 0x3de   :  { %2979 = vtanh.f32 %v3507_v42  ;;  %v495_v34 = vrot.slane %v3507_v42, 7 }
 0x3e4   :  { %v2980_v43 = vpop.eup %2979 }
 0x3e5   :  { %411 = vrot.lane.b32.xlu0 %v2980_v43, %s3354_s30 }
 0x3f5   :  { %v398_v46 = vpop.permute.xlu0 %397 }
 0x3f6   :  { %v3512_v47 = vadd.f32 %v398_v46, %v383_v45 }
 0x3f8   :  { %2981 = vtanh.f32 %v3512_v47  ;;  %v494_v33 = vrot.slane %v3512_v47, 7 }
 0x3fe   :  { %v2982_v48 = vpop.eup %2981 }
 0x3ff   :  { %409 = vrot.lane.b32.xlu2 %v2982_v48, %s3354_s30 }
 0x457   :  { %v412_v49 = vpop.permute.xlu0 %411 }
 0x458   :  { %v3518_v52 = vmul.f32 %v412_v49, %v373_v25 }
 0x459   :  { %v410_v50 = vpop.permute.xlu2 %409 }
 0x45a   :  { %v3516_v51 = vmul.f32 %v410_v50, %v358_v37  ;;  %v1114_v48 = vsel %vm1112_vm14, %v3491_v59, %v3518_v52 }
 0x45c   :  { %v419_v53 = vrot.slane %v3516_v51, 1  ;;  %v1113_v46 = vsel %vm1112_vm14, %v3494_v62, %v3516_v51 }
 0x45e   :  { %v420_v54 = vsel %vm305_vm9, %v3518_v52, %v419_v53 }
 0x45f   :  { %421 = vrot.lane.b32.xlu1 %v420_v54, %s3357_s3 }
 0x4d1   :  { %v422_v55 = vpop.permute.xlu1 %421 }
 0x4d2   :  { %2781 = vmatmul.msk.f32.vlgmr.msra.gmra.mxu3 %vm198_vm10, %v422_v55 }
 0x555   :  { %v442_v56 = vpop.f32.mrf.mxu3 }
 0x556   :  { %v446_v57 = vrot.slane %v442_v56, 6  ;;  %v447_v58 = vrot.slane %v442_v56, 7 }
 0x558   :  { %v450_v60 = vadd.f32 %v446_v57, %v3476_v16  ;;  %v451_v61 = vadd.f32 %v447_v58, %v3473_v14 }
 0x55a   :  { %2983 = vtanh.f32 %v450_v60  ;;  %v2782_v1 = vmul.f32 -1.442695, %v450_v60  ;;  %v2783_v5 = vmul.f32 -1.442695, %v451_v61 }
 0x55b   :  { %2985 = vtanh.f32 %v451_v61 }
 0x55c   :  { %2987 = vpow2.f32 %v2782_v1 }
 0x560   :  { %v2984_v63 = vpop.eup %2983 }
 0x561   :  { %v2986_v0 = vpop.eup %2985  ;;  %502 = vrot.lane.b32.xlu2 %v2984_v63, %s3354_s30 }
 0x562   :  { %504 = vrot.lane.b32.xlu0 %v2986_v0, %s3354_s30  ;;  %v2988_v2 = vpop.eup %2987 }
 0x563   :  { %v458_v3 = vadd.f32 1.0, %v2988_v2 }
 0x565   :  { %2989 = vrcp.f32 %v458_v3  ;;  %v471_v12 = vand.u32 2147483648, %v458_v3  ;;  %vm465_vm5 = vweird.f32 %v458_v3  ;;  %v469_v13 = vand.u32 2147483647, %v458_v3 }
 0x566   :  { %2991 = vpow2.f32 %v2783_v5 }
 0x567   :  { %v472_v17 = vor.u32 1.1754944e-38, %v471_v12  ;;  %vm470_vm7 = vcmp.eq.f32.partialorder %v469_v13, 8.507059e+37 }
 0x56b   :  { %v2990_v4 = vpop.eup %2989 }
 0x56c   :  { %v461_v6 = vmul.f32 %v2990_v4, %v458_v3  ;;  %v2992_v9 = vpop.eup %2991  ;;  %vm466_vm4 = vweird.f32 %v2990_v4 }
 0x56d   :  { %v459_v10 = vadd.f32 1.0, %v2992_v9  ;;  %vm467_vm6 = vmor %vm465_vm5, %vm466_vm4 }
 0x56e   :  { %v462_v7 = vsub.f32 1.0, %v461_v6 }
 0x56f   :  { %2993 = vrcp.f32 %v459_v10  ;;  %v486_v26 = vand.u32 2147483648, %v459_v10  ;;  %vm480_vm11 = vweird.f32 %v459_v10  ;;  %v484_v27 = vand.u32 2147483647, %v459_v10 }
 0x570   :  { %v463_v8 = vmul.f32 %v2990_v4, %v462_v7 }
 0x571   :  { %v487_v29 = vor.u32 1.1754944e-38, %v486_v26  ;;  %vm485_vm13 = vcmp.eq.f32.partialorder %v484_v27, 8.507059e+37 }
 0x572   :  { %v464_v11 = vadd.f32 %v2990_v4, %v463_v8 }
 0x574   :  { %v468_v15 = vsel %vm467_vm6, %v2990_v4, %v464_v11 }
 0x575   :  { %v473_v19 = vsel %vm470_vm7, %v472_v17, %v468_v15  ;;  %v2994_v21 = vpop.eup %2993 }
 0x576   :  { %v476_v22 = vmul.f32 %v2994_v21, %v459_v10  ;;  %vm481_vm8 = vweird.f32 %v2994_v21  ;;  %v498_v35 = vmul.f32 %v494_v33, %v473_v19 }
 0x577   :  { %vm482_vm12 = vmor %vm480_vm11, %vm481_vm8  ;;  %vm1118_vm11 = vcmask 1042432  }
 0x578   :  { %v477_v23 = vsub.f32 1.0, %v476_v22 }
 0x57a   :  { %v478_v24 = vmul.f32 %v2994_v21, %v477_v23 }
 0x57c   :  { %v479_v25 = vadd.f32 %v2994_v21, %v478_v24 }
 0x57e   :  { %v483_v28 = vsel %vm482_vm12, %v2994_v21, %v479_v25 }
 0x57f   :  { %v488_v31 = vsel %vm485_vm13, %v487_v29, %v483_v28 }
 0x580   :  { %v499_v36 = vmul.f32 %v495_v34, %v488_v31 }
 0x5bb   :  { %v503_v18 = vpop.permute.xlu2 %502 }
 0x5bc   :  { %v508_v20 = vmul.f32 %v503_v18, %v473_v19 }
 0x5be   :  { %512 = vrot.lane.b32.xlu1 %v508_v20, %s3357_s3 }
 0x5d4   :  { %v505_v30 = vpop.permute.xlu0 %504 }
 0x5d5   :  { %v509_v32 = vmul.f32 %v505_v30, %v488_v31 }
 0x5d7   :  { %514 = vrot.lane.b32.xlu2 %v509_v32, %s3357_s3 }
 0x630   :  { %v513_v37 = vpop.permute.xlu1 %512 }
 0x631   :  { %v515_v38 = vpop.permute.xlu2 %514  ;;  %v3533_v39 = vadd.f32 %v513_v37, %v498_v35 }
 0x632   :  { %v3535_v40 = vadd.f32 %v515_v38, %v499_v36 }
 0x633   :  { %2995 = vtanh.f32 %v3533_v39  ;;  %v610_v30 = vrot.slane %v3533_v39, 7 }
 0x634   :  { %2997 = vtanh.f32 %v3535_v40  ;;  %v611_v35 = vrot.slane %v3535_v40, 7 }
 0x639   :  { %v2996_v41 = vpop.eup %2995 }
 0x63a   :  { %v2998_v43 = vpop.eup %2997  ;;  %524 = vrot.lane.b32.xlu0 %v2996_v41, %s3354_s30 }
 0x63b   :  { %526 = vrot.lane.b32.xlu1 %v2998_v43, %s3354_s30 }
 0x6ac   :  { %v525_v42 = vpop.permute.xlu0 %524 }
 0x6ad   :  { %v527_v44 = vpop.permute.xlu1 %526  ;;  %v530_v45 = vmul.f32 %v525_v42, %v473_v19 }
 0x6ae   :  { %v531_v47 = vmul.f32 %v527_v44, %v488_v31 }
 0x6af   :  { %v534_v49 = vrot.slane %v530_v45, 2  ;;  %v3545_v50 = vsel %vm1115_vm15, %v1113_v46, %v530_v45 }
 0x6b0   :  { %v535_v53 = vrot.slane %v531_v47, 1  ;;  %v3547_v54 = vsel %vm1115_vm15, %v1114_v48, %v531_v47 }
 0x6b2   :  { %v536_v55 = vsel %vm305_vm9, %v535_v53, %v534_v49 }
 0x6b3   :  { %537 = vrot.lane.b32.xlu2 %v536_v55, %s3357_s3 }
 0x70d   :  { %v538_v56 = vpop.permute.xlu2 %537 }
 0x70e   :  { %2784 = vmatmul.msk.f32.vlgmr.msrb.gmra.mxu1 %vm198_vm10, %v538_v56 }
 0x78b   :  { %v558_v57 = vpop.f32.mrf.mxu1 }
 0x78c   :  { %v562_v58 = vrot.slane %v558_v57, 5  ;;  %v563_v62 = vrot.slane %v558_v57, 6 }
 0x78e   :  { %v566_v51 = vadd.f32 %v562_v58, %v3476_v16  ;;  %v567_v59 = vadd.f32 %v563_v62, %v3473_v14 }
 0x790   :  { %2999 = vtanh.f32 %v566_v51  ;;  %v2785_v61 = vmul.f32 -1.442695, %v566_v51  ;;  %v2786_v63 = vmul.f32 -1.442695, %v567_v59 }
 0x791   :  { %3001 = vtanh.f32 %v567_v59 }
 0x792   :  { %3003 = vpow2.f32 %v2785_v61 }
 0x793   :  { %3005 = vpow2.f32 %v2786_v63 }
 0x796   :  { %v3000_v52 = vpop.eup %2999 }
 0x797   :  { %v3002_v60 = vpop.eup %3001  ;;  %618 = vrot.lane.b32.xlu0 %v3000_v52, %s3354_s30 }
 0x798   :  { %620 = vrot.lane.b32.xlu1 %v3002_v60, %s3354_s30  ;;  %v3004_v0 = vpop.eup %3003 }
 0x799   :  { %v3006_v1 = vpop.eup %3005  ;;  %v574_v2 = vadd.f32 1.0, %v3004_v0 }
 0x79a   :  { %v575_v3 = vadd.f32 1.0, %v3006_v1 }
 0x79b   :  { %3007 = vrcp.f32 %v574_v2  ;;  %v587_v15 = vand.u32 2147483648, %v574_v2  ;;  %vm581_vm3 = vweird.f32 %v574_v2  ;;  %v585_v18 = vand.u32 2147483647, %v574_v2 }
 0x79c   :  { %3009 = vrcp.f32 %v575_v3  ;;  %v602_v17 = vand.u32 2147483648, %v575_v3  ;;  %vm596_vm4 = vweird.f32 %v575_v3  ;;  %v600_v19 = vand.u32 2147483647, %v575_v3 }
 0x79d   :  { %v588_v22 = vor.u32 1.1754944e-38, %v587_v15  ;;  %vm586_vm7 = vcmp.eq.f32.partialorder %v585_v18, 8.507059e+37 }
 0x79e   :  { %v603_v23 = vor.u32 1.1754944e-38, %v602_v17  ;;  %vm601_vm8 = vcmp.eq.f32.partialorder %v600_v19, 8.507059e+37 }
 0x7a1   :  { %v3008_v4 = vpop.eup %3007 }
 0x7a2   :  { %v3010_v5 = vpop.eup %3009  ;;  %v577_v6 = vmul.f32 %v3008_v4, %v574_v2  ;;  %vm582_vm1 = vweird.f32 %v3008_v4 }
 0x7a3   :  { %v592_v7 = vmul.f32 %v3010_v5, %v575_v3  ;;  %vm597_vm2 = vweird.f32 %v3010_v5  ;;  %vm583_vm5 = vmor %vm581_vm3, %vm582_vm1 }
 0x7a4   :  { %v578_v8 = vsub.f32 1.0, %v577_v6  ;;  %vm598_vm6 = vmor %vm596_vm4, %vm597_vm2 }
 0x7a5   :  { %v593_v9 = vsub.f32 1.0, %v592_v7 }
 0x7a6   :  { %v579_v10 = vmul.f32 %v3008_v4, %v578_v8 }
 0x7a7   :  { %v594_v11 = vmul.f32 %v3010_v5, %v593_v9 }
 0x7a8   :  { %v580_v12 = vadd.f32 %v3008_v4, %v579_v10 }
 0x7a9   :  { %v595_v13 = vadd.f32 %v3010_v5, %v594_v11 }
 0x7aa   :  { %v584_v20 = vsel %vm583_vm5, %v3008_v4, %v580_v12  ;;  %vm1121_vm5 = vcmask 1043456  }
 0x7ab   :  { %v599_v21 = vsel %vm598_vm6, %v3010_v5, %v595_v13  ;;  %v589_v25 = vsel %vm586_vm7, %v588_v22, %v584_v20 }
 0x7ac   :  { %v604_v27 = vsel %vm601_vm8, %v603_v23, %v599_v21  ;;  %v614_v31 = vmul.f32 %v610_v30, %v589_v25 }
 0x7ad   :  { %v615_v36 = vmul.f32 %v611_v35, %v604_v27 }
 0x809   :  { %v619_v24 = vpop.permute.xlu0 %618 }
 0x80a   :  { %v621_v26 = vpop.permute.xlu1 %620  ;;  %v624_v28 = vmul.f32 %v619_v24, %v589_v25 }
 0x80b   :  { %v625_v29 = vmul.f32 %v621_v26, %v604_v27 }
 0x80c   :  { %628 = vrot.lane.b32.xlu2 %v624_v28, %s3357_s3 }
 0x80d   :  { %630 = vrot.lane.b32.xlu0 %v625_v29, %s3357_s3 }
 0x866   :  { %v629_v32 = vpop.permute.xlu2 %628 }
 0x867   :  { %v3559_v33 = vadd.f32 %v629_v32, %v614_v31 }
 0x869   :  { %3011 = vtanh.f32 %v3559_v33  ;;  %v726_v30 = vrot.slane %v3559_v33, 7 }
 0x86f   :  { %v3012_v34 = vpop.eup %3011 }
 0x870   :  { %640 = vrot.lane.b32.xlu1 %v3012_v34, %s3354_s30 }
 0x87f   :  { %v631_v37 = vpop.permute.xlu0 %630 }
 0x880   :  { %v3564_v38 = vadd.f32 %v631_v37, %v615_v36 }
 0x882   :  { %3013 = vtanh.f32 %v3564_v38 }
 0x888   :  { %v3014_v41 = vpop.eup %3013 }
 0x889   :  { %642 = vrot.lane.b32.xlu2 %v3014_v41, %s3354_s30 }
 0x8e2   :  { %v641_v39 = vpop.permute.xlu1 %640 }
 0x8e3   :  { %v643_v43 = vpop.permute.xlu2 %642  ;;  %v646_v42 = vmul.f32 %v641_v39, %v589_v25  ;;  %v727_v25 = vrot.slane %v3564_v38, 7 }
 0x8e4   :  { %v647_v44 = vmul.f32 %v643_v43, %v604_v27 }
 0x8e5   :  { %v650_v45 = vrot.slane %v646_v42, 3  ;;  %v3569_v46 = vsel %vm1118_vm11, %v3545_v50, %v646_v42 }
 0x8e6   :  { %v651_v47 = vrot.slane %v647_v44, 2  ;;  %v3572_v40 = vsel %vm1118_vm11, %v3547_v54, %v647_v44 }
 0x8e8   :  { %v652_v48 = vsel %vm305_vm9, %v651_v47, %v650_v45 }
 0x8e9   :  { %653 = vrot.lane.b32.xlu0 %v652_v48, %s3357_s3 }
 0x95b   :  { %v654_v49 = vpop.permute.xlu0 %653 }
 0x95c   :  { %2787 = vmatmul.msk.f32.vlgmr.msrb.gmra.mxu2 %vm198_vm10, %v654_v49 }
 0x9df   :  { %v674_v53 = vpop.f32.mrf.mxu2 }
 0x9e0   :  { %v678_v55 = vrot.slane %v674_v53, 4  ;;  %v679_v56 = vrot.slane %v674_v53, 5 }
 0x9e2   :  { %v682_v57 = vadd.f32 %v678_v55, %v3476_v16  ;;  %v683_v58 = vadd.f32 %v679_v56, %v3473_v14 }
 0x9e4   :  { %3015 = vtanh.f32 %v682_v57  ;;  %v2789_v54 = vmul.f32 -1.442695, %v683_v58  ;;  %v2788_v60 = vmul.f32 -1.442695, %v682_v57 }
 0x9e5   :  { %3017 = vtanh.f32 %v683_v58 }
 0x9e6   :  { %3019 = vpow2.f32 %v2789_v54 }
 0x9ea   :  { %v3016_v50 = vpop.eup %3015 }
 0x9eb   :  { %v3018_v62 = vpop.eup %3017  ;;  %734 = vrot.lane.b32.xlu1 %v3016_v50, %s3354_s30 }
 0x9ec   :  { %736 = vrot.lane.b32.xlu2 %v3018_v62, %s3354_s30  ;;  %v3020_v51 = vpop.eup %3019 }
 0x9ed   :  { %v691_v59 = vadd.f32 1.0, %v3020_v51 }
 0x9ef   :  { %3021 = vrcp.f32 %v691_v59  ;;  %v718_v4 = vand.u32 2147483648, %v691_v59  ;;  %vm712_vm13 = vweird.f32 %v691_v59  ;;  %v716_v5 = vand.u32 2147483647, %v691_v59 }
 0x9f0   :  { %3023 = vpow2.f32 %v2788_v60 }
 0x9f1   :  { %v719_v7 = vor.u32 1.1754944e-38, %v718_v4  ;;  %vm717_vm15 = vcmp.eq.f32.partialorder %v716_v5, 8.507059e+37 }
 0x9f5   :  { %v3022_v52 = vpop.eup %3021 }
 0x9f6   :  { %v708_v61 = vmul.f32 %v3022_v52, %v691_v59  ;;  %v3024_v0 = vpop.eup %3023  ;;  %vm713_vm12 = vweird.f32 %v3022_v52 }
 0x9f7   :  { %v690_v2 = vadd.f32 1.0, %v3024_v0  ;;  %vm714_vm14 = vmor %vm712_vm13, %vm713_vm12 }
 0x9f8   :  { %v709_v63 = vsub.f32 1.0, %v708_v61 }
 0x9f9   :  { %3025 = vrcp.f32 %v690_v2  ;;  %v703_v18 = vand.u32 2147483648, %v690_v2  ;;  %vm697_vm2 = vweird.f32 %v690_v2  ;;  %v701_v19 = vand.u32 2147483647, %v690_v2 }
 0x9fa   :  { %v710_v1 = vmul.f32 %v3022_v52, %v709_v63 }
 0x9fb   :  { %v704_v21 = vor.u32 1.1754944e-38, %v703_v18  ;;  %vm702_vm4 = vcmp.eq.f32.partialorder %v701_v19, 8.507059e+37 }
 0x9fc   :  { %v711_v3 = vadd.f32 %v3022_v52, %v710_v1 }
 0x9fe   :  { %v715_v6 = vsel %vm714_vm14, %v3022_v52, %v711_v3 }
 0x9ff   :  { %v720_v9 = vsel %vm717_vm15, %v719_v7, %v715_v6  ;;  %v3026_v10 = vpop.eup %3025 }
 0xa00   :  { %v693_v12 = vmul.f32 %v3026_v10, %v690_v2  ;;  %vm698_vm1 = vweird.f32 %v3026_v10  ;;  %v731_v26 = vmul.f32 %v727_v25, %v720_v9 }
 0xa01   :  { %vm699_vm3 = vmor %vm697_vm2, %vm698_vm1  ;;  %vm1124_vm1 = vcmask 1044480  }
 0xa02   :  { %v694_v13 = vsub.f32 1.0, %v693_v12 }
 0xa04   :  { %v695_v15 = vmul.f32 %v3026_v10, %v694_v13 }
 0xa06   :  { %v696_v17 = vadd.f32 %v3026_v10, %v695_v15 }
 0xa08   :  { %v700_v20 = vsel %vm699_vm3, %v3026_v10, %v696_v17 }
 0xa09   :  { %v705_v23 = vsel %vm702_vm4, %v704_v21, %v700_v20 }
 0xa0a   :  { %v730_v31 = vmul.f32 %v726_v30, %v705_v23 }
 0xa46   :  { %v737_v8 = vpop.permute.xlu2 %736 }
 0xa47   :  { %v741_v11 = vmul.f32 %v737_v8, %v720_v9 }
 0xa49   :  { %746 = vrot.lane.b32.xlu1 %v741_v11, %s3357_s3 }
 0xa5d   :  { %v735_v22 = vpop.permute.xlu1 %734 }
 0xa5e   :  { %v740_v24 = vmul.f32 %v735_v22, %v705_v23 }
 0xa60   :  { %744 = vrot.lane.b32.xlu0 %v740_v24, %s3357_s3 }
 0xabb   :  { %v747_v27 = vpop.permute.xlu1 %746 }
 0xabc   :  { %v3584_v28 = vadd.f32 %v747_v27, %v731_v26 }
 0xabe   :  { %3027 = vtanh.f32 %v3584_v28  ;;  %v843_v21 = vrot.slane %v3584_v28, 7 }
 0xac4   :  { %v3028_v29 = vpop.eup %3027 }
 0xac5   :  { %758 = vrot.lane.b32.xlu0 %v3028_v29, %s3354_s30 }
 0xad2   :  { %v745_v32 = vpop.permute.xlu0 %744 }
 0xad3   :  { %v3589_v34 = vadd.f32 %v745_v32, %v730_v31 }
 0xad5   :  { %3029 = vtanh.f32 %v3589_v34  ;;  %v842_v20 = vrot.slane %v3589_v34, 7 }
 0xadb   :  { %v3030_v35 = vpop.eup %3029 }
 0xadc   :  { %756 = vrot.lane.b32.xlu2 %v3030_v35, %s3354_s30 }
 0xb36   :  { %v757_v36 = vpop.permute.xlu2 %756 }
 0xb37   :  { %v759_v37 = vpop.permute.xlu0 %758  ;;  %v762_v38 = vmul.f32 %v757_v36, %v705_v23 }
 0xb38   :  { %v763_v41 = vmul.f32 %v759_v37, %v720_v9 }
 0xb39   :  { %v766_v39 = vrot.slane %v762_v38, 4  ;;  %v3595_v43 = vsel %vm1121_vm5, %v3569_v46, %v762_v38 }
 0xb3a   :  { %v767_v33 = vrot.slane %v763_v41, 3  ;;  %v3599_v42 = vsel %vm1121_vm5, %v3572_v40, %v763_v41 }
 0xb3c   :  { %v768_v44 = vsel %vm305_vm9, %v767_v33, %v766_v39 }
 0xb3d   :  { %769 = vrot.lane.b32.xlu1 %v768_v44, %s3357_s3 }
 0xbaf   :  { %v770_v45 = vpop.permute.xlu1 %769 }
 0xbb0   :  { %2790 = vmatmul.msk.f32.vlgmr.msrb.gmra.mxu3 %vm198_vm10, %v770_v45 }
 0xc33   :  { %v790_v47 = vpop.f32.mrf.mxu3 }
 0xc34   :  { %v794_v48 = vrot.slane %v790_v47, 3  ;;  %v795_v49 = vrot.slane %v790_v47, 4 }
 0xc36   :  { %v798_v53 = vadd.f32 %v794_v48, %v3476_v16  ;;  %v799_v46 = vadd.f32 %v795_v49, %v3473_v14 }
 0xc38   :  { %3031 = vtanh.f32 %v798_v53  ;;  %v2791_v40 = vmul.f32 -1.442695, %v798_v53  ;;  %v2792_v62 = vmul.f32 -1.442695, %v799_v46 }
 0xc39   :  { %3033 = vtanh.f32 %v799_v46 }
 0xc3a   :  { %3035 = vpow2.f32 %v2791_v40 }
 0xc3e   :  { %v3032_v55 = vpop.eup %3031 }
 0xc3f   :  { %v3034_v56 = vpop.eup %3033  ;;  %850 = vrot.lane.b32.xlu2 %v3032_v55, %s3354_s30 }
 0xc40   :  { %852 = vrot.lane.b32.xlu0 %v3034_v56, %s3354_s30  ;;  %v3036_v57 = vpop.eup %3035 }
 0xc41   :  { %v806_v58 = vadd.f32 1.0, %v3036_v57 }
 0xc43   :  { %3037 = vrcp.f32 %v806_v58  ;;  %v819_v63 = vand.u32 2147483648, %v806_v58  ;;  %vm813_vm7 = vweird.f32 %v806_v58  ;;  %v817_v0 = vand.u32 2147483647, %v806_v58 }
 0xc44   :  { %3039 = vpow2.f32 %v2792_v62 }
 0xc45   :  { %v820_v2 = vor.u32 1.1754944e-38, %v819_v63  ;;  %vm818_vm11 = vcmp.eq.f32.partialorder %v817_v0, 8.507059e+37 }
 0xc49   :  { %v3038_v50 = vpop.eup %3037 }
 0xc4a   :  { %v809_v54 = vmul.f32 %v3038_v50, %v806_v58  ;;  %v3040_v52 = vpop.eup %3039  ;;  %vm814_vm6 = vweird.f32 %v3038_v50 }
 0xc4b   :  { %v807_v60 = vadd.f32 1.0, %v3040_v52  ;;  %vm815_vm8 = vmor %vm813_vm7, %vm814_vm6 }
 0xc4c   :  { %v810_v51 = vsub.f32 1.0, %v809_v54 }
 0xc4d   :  { %3041 = vrcp.f32 %v807_v60  ;;  %v834_v11 = vand.u32 2147483648, %v807_v60  ;;  %vm828_vm13 = vweird.f32 %v807_v60  ;;  %v832_v12 = vand.u32 2147483647, %v807_v60 }
 0xc4e   :  { %v811_v59 = vmul.f32 %v3038_v50, %v810_v51 }
 0xc4f   :  { %v835_v15 = vor.u32 1.1754944e-38, %v834_v11  ;;  %vm833_vm15 = vcmp.eq.f32.partialorder %v832_v12, 8.507059e+37 }
 0xc50   :  { %v812_v61 = vadd.f32 %v3038_v50, %v811_v59 }
 0xc52   :  { %v816_v1 = vsel %vm815_vm8, %v3038_v50, %v812_v61 }
 0xc53   :  { %v821_v4 = vsel %vm818_vm11, %v820_v2, %v816_v1  ;;  %v3042_v6 = vpop.eup %3041 }
 0xc54   :  { %v824_v7 = vmul.f32 %v3042_v6, %v807_v60  ;;  %vm829_vm12 = vweird.f32 %v3042_v6  ;;  %v846_v22 = vmul.f32 %v842_v20, %v821_v4 }
 0xc55   :  { %vm830_vm14 = vmor %vm828_vm13, %vm829_vm12  ;;  %vm1127_vm13 = vcmask 1045504  }
 0xc56   :  { %v825_v8 = vsub.f32 1.0, %v824_v7 }
 0xc58   :  { %v826_v9 = vmul.f32 %v3042_v6, %v825_v8 }
 0xc5a   :  { %v827_v10 = vadd.f32 %v3042_v6, %v826_v9 }
 0xc5c   :  { %v831_v13 = vsel %vm830_vm14, %v3042_v6, %v827_v10 }
 0xc5d   :  { %v836_v18 = vsel %vm833_vm15, %v835_v15, %v831_v13 }
 0xc5e   :  { %v847_v23 = vmul.f32 %v843_v21, %v836_v18 }
 0xc99   :  { %v851_v3 = vpop.permute.xlu2 %850 }
 0xc9a   :  { %v856_v5 = vmul.f32 %v851_v3, %v821_v4 }
 0xc9c   :  { %860 = vrot.lane.b32.xlu1 %v856_v5, %s3357_s3 }
 0xcb2   :  { %v853_v17 = vpop.permute.xlu0 %852 }
 0xcb3   :  { %v857_v19 = vmul.f32 %v853_v17, %v836_v18 }
 0xcb5   :  { %862 = vrot.lane.b32.xlu2 %v857_v19, %s3357_s3 }
 0xd0e   :  { %v861_v24 = vpop.permute.xlu1 %860 }
 0xd0f   :  { %v863_v25 = vpop.permute.xlu2 %862  ;;  %v3612_v26 = vadd.f32 %v861_v24, %v846_v22 }
 0xd10   :  { %v3614_v27 = vadd.f32 %v863_v25, %v847_v23 }
 0xd11   :  { %3043 = vtanh.f32 %v3612_v26  ;;  %v958_v13 = vrot.slane %v3612_v26, 7 }
 0xd12   :  { %3045 = vtanh.f32 %v3614_v27  ;;  %v959_v20 = vrot.slane %v3614_v27, 7 }
 0xd17   :  { %v3044_v29 = vpop.eup %3043 }
 0xd18   :  { %v3046_v30 = vpop.eup %3045  ;;  %872 = vrot.lane.b32.xlu0 %v3044_v29, %s3354_s30 }
 0xd19   :  { %874 = vrot.lane.b32.xlu1 %v3046_v30, %s3354_s30 }
 0xd8a   :  { %v873_v28 = vpop.permute.xlu0 %872 }
 0xd8b   :  { %v875_v31 = vpop.permute.xlu1 %874  ;;  %v878_v32 = vmul.f32 %v873_v28, %v821_v4 }
 0xd8c   :  { %v879_v34 = vmul.f32 %v875_v31, %v836_v18 }
 0xd8d   :  { %v882_v35 = vrot.slane %v878_v32, 5  ;;  %v3621_v36 = vsel %vm1124_vm1, %v3595_v43, %v878_v32 }
 0xd8e   :  { %v883_v37 = vrot.slane %v879_v34, 4  ;;  %v3624_v38 = vsel %vm1124_vm1, %v3599_v42, %v879_v34 }
 0xd90   :  { %v884_v41 = vsel %vm305_vm9, %v883_v37, %v882_v35 }
 0xd91   :  { %885 = vrot.lane.b32.xlu2 %v884_v41, %s3357_s3 }
 0xdeb   :  { %v886_v39 = vpop.permute.xlu2 %885 }
 0xdec   :  { %2793 = vmatmul.msk.f32.vlgmr.msrb.gmra.mxu0 %vm198_vm10, %v886_v39 }
 0xe69   :  { %v906_v33 = vpop.f32.mrf.mxu0 }
 0xe6a   :  { %v910_v44 = vrot.slane %v906_v33, 2  ;;  %v911_v45 = vrot.slane %v906_v33, 3 }
 0xe6c   :  { %v914_v47 = vadd.f32 %v910_v44, %v3476_v16  ;;  %v915_v48 = vadd.f32 %v911_v45, %v3473_v14 }
 0xe6e   :  { %3047 = vtanh.f32 %v914_v47  ;;  %v2794_v42 = vmul.f32 -1.442695, %v914_v47  ;;  %v2795_v53 = vmul.f32 -1.442695, %v915_v48 }
 0xe6f   :  { %3049 = vtanh.f32 %v915_v48 }
 0xe70   :  { %3051 = vpow2.f32 %v2794_v42 }
 0xe71   :  { %3053 = vpow2.f32 %v2795_v53 }
 0xe74   :  { %v3048_v43 = vpop.eup %3047 }
 0xe75   :  { %v3050_v49 = vpop.eup %3049  ;;  %966 = vrot.lane.b32.xlu0 %v3048_v43, %s3354_s30 }
 0xe76   :  { %968 = vrot.lane.b32.xlu1 %v3050_v49, %s3354_s30  ;;  %v3052_v46 = vpop.eup %3051 }
 0xe77   :  { %v3054_v55 = vpop.eup %3053  ;;  %v922_v56 = vadd.f32 1.0, %v3052_v46 }
 0xe78   :  { %v923_v40 = vadd.f32 1.0, %v3054_v55 }
 0xe79   :  { %3055 = vrcp.f32 %v922_v56  ;;  %v935_v63 = vand.u32 2147483648, %v922_v56  ;;  %vm929_vm4 = vweird.f32 %v922_v56  ;;  %v933_v1 = vand.u32 2147483647, %v922_v56 }
 0xe7a   :  { %3057 = vrcp.f32 %v923_v40  ;;  %v950_v0 = vand.u32 2147483648, %v923_v40  ;;  %vm944_vm6 = vweird.f32 %v923_v40  ;;  %v948_v2 = vand.u32 2147483647, %v923_v40 }
 0xe7b   :  { %v936_v5 = vor.u32 1.1754944e-38, %v935_v63  ;;  %vm934_vm11 = vcmp.eq.f32.partialorder %v933_v1, 8.507059e+37 }
 0xe7c   :  { %v951_v6 = vor.u32 1.1754944e-38, %v950_v0  ;;  %vm949_vm12 = vcmp.eq.f32.partialorder %v948_v2, 8.507059e+37 }
 0xe7f   :  { %v3056_v57 = vpop.eup %3055 }
 0xe80   :  { %v3058_v58 = vpop.eup %3057  ;;  %v925_v50 = vmul.f32 %v3056_v57, %v922_v56  ;;  %vm930_vm2 = vweird.f32 %v3056_v57 }
 0xe81   :  { %v940_v62 = vmul.f32 %v3058_v58, %v923_v40  ;;  %vm945_vm3 = vweird.f32 %v3058_v58  ;;  %vm931_vm7 = vmor %vm929_vm4, %vm930_vm2 }
 0xe82   :  { %v926_v54 = vsub.f32 1.0, %v925_v50  ;;  %vm946_vm8 = vmor %vm944_vm6, %vm945_vm3 }
 0xe83   :  { %v941_v51 = vsub.f32 1.0, %v940_v62 }
 0xe84   :  { %v927_v59 = vmul.f32 %v3056_v57, %v926_v54 }
 0xe85   :  { %v942_v52 = vmul.f32 %v3058_v58, %v941_v51 }
 0xe86   :  { %v928_v60 = vadd.f32 %v3056_v57, %v927_v59 }
 0xe87   :  { %v943_v61 = vadd.f32 %v3058_v58, %v942_v52 }
 0xe88   :  { %v932_v3 = vsel %vm931_vm7, %v3056_v57, %v928_v60 }
 0xe89   :  { %v947_v4 = vsel %vm946_vm8, %v3058_v58, %v943_v61  ;;  %v937_v8 = vsel %vm934_vm11, %v936_v5, %v932_v3  ;;  %vm1130_vm8 = vcmask 1046528   ;;  %vm1342_vm11 = vcmask 31744  }
 0xe8a   :  { %v952_v10 = vsel %vm949_vm12, %v951_v6, %v947_v4  ;;  %v962_v15 = vmul.f32 %v958_v13, %v937_v8 }
 0xe8b   :  { %v963_v21 = vmul.f32 %v959_v20, %v952_v10 }
 0xee7   :  { %v967_v7 = vpop.permute.xlu0 %966 }
 0xee8   :  { %v969_v9 = vpop.permute.xlu1 %968  ;;  %v972_v11 = vmul.f32 %v967_v7, %v937_v8 }
 0xee9   :  { %v973_v12 = vmul.f32 %v969_v9, %v952_v10 }
 0xeea   :  { %976 = vrot.lane.b32.xlu2 %v972_v11, %s3357_s3 }
 0xeeb   :  { %978 = vrot.lane.b32.xlu0 %v973_v12, %s3357_s3 }
 0xf44   :  { %v977_v17 = vpop.permute.xlu2 %976 }
 0xf45   :  { %v3636_v18 = vadd.f32 %v977_v17, %v962_v15 }
 0xf47   :  { %3059 = vtanh.f32 %v3636_v18  ;;  %v1074_v11 = vrot.slane %v3636_v18, 7  ;;  %v1136_v18 = vld [vmem:[#allocation9 + $0x18] sm:$0xff] }
 0xf48   :  { %1163 = vmatpush.msra.mxu2 %v1136_v18 }
 0xf4d   :  { %v3060_v19 = vpop.eup %3059 }
 0xf4e   :  { %988 = vrot.lane.b32.xlu1 %v3060_v19, %s3354_s30 }
 0xf5d   :  { %v979_v22 = vpop.permute.xlu0 %978 }
 0xf5e   :  { %v3641_v23 = vadd.f32 %v979_v22, %v963_v21 }
 0xf60   :  { %3061 = vtanh.f32 %v3641_v23  ;;  %v1075_v6 = vrot.slane %v3641_v23, 7 }
 0xf66   :  { %v3062_v24 = vpop.eup %3061 }
 0xf67   :  { %990 = vrot.lane.b32.xlu2 %v3062_v24, %s3354_s30 }
 0xfc0   :  { %v989_v25 = vpop.permute.xlu1 %988 }
 0xfc1   :  { %v991_v26 = vpop.permute.xlu2 %990  ;;  %v994_v29 = vmul.f32 %v989_v25, %v937_v8  ;;  %v1177_v25 = vld [vmem:[#allocation11 + $0x18] sm:$0xff] }
 0xfc2   :  { %v995_v30 = vmul.f32 %v991_v26, %v952_v10  ;;  %v1208_v26 = vld [vmem:[#allocation12 + $0x18] sm:$0xff]  ;;  %1194 = vmatpush.msra.mxu3 %v1177_v25 }
 0xfc3   :  { %v998_v28 = vrot.slane %v994_v29, 6  ;;  %v3646_v31 = vsel %vm1127_vm13, %v3621_v36, %v994_v29  ;;  %v1135_v29 = vld [vmem:[#allocation9 + $0x10] sm:$0xff]  ;;  %1225 = vmatpush.msra.mxu0 %v1208_v26 }
 0xfc4   :  { %v999_v32 = vrot.slane %v995_v30, 5  ;;  %v3649_v27 = vsel %vm1127_vm13, %v3624_v38, %v995_v30  ;;  %v1176_v30 = vld [vmem:[#allocation11 + $0x10] sm:$0xff]  ;;  %1164 = vmatpush.msra.mxu2 %v1135_v29 }
 0xfc5   :  { %1195 = vmatpush.msra.mxu3 %v1176_v30 }
 0xfc6   :  { %v1000_v34 = vsel %vm305_vm9, %v999_v32, %v998_v28  ;;  %v1207_v28 = vld [vmem:[#allocation12 + $0x10] sm:$0xff]  ;;  %v1134_v32 = vld [vmem:[#allocation9 + $0x8] sm:$0xff] }
 0xfc7   :  { %1001 = vrot.lane.b32.xlu0 %v1000_v34, %s3357_s3  ;;  %v1175_v34 = vld [vmem:[#allocation11 + $0x8] sm:$0xff]  ;;  %1226 = vmatpush.msra.mxu0 %v1207_v28 }
 0xfc8   :  { %1165 = vmatpush.msra.mxu2 %v1134_v32  ;;  %1196 = vmatpush.msra.mxu3 %v1175_v34 }
0x1039   :  { %v1002_v35 = vpop.permute.xlu0 %1001 }
0x103a   :  { %2796 = vmatmul.msk.f32.vlgmr.msra.gmra.mxu1 %vm198_vm10, %v1002_v35  ;;  %v1174_v35 = vld [vmem:[#allocation11] sm:$0xff] }
0x103b   :  { %1197 = vmatpush.msra.mxu3 %v1174_v35 }
0x10b7   :  { %v1022_v37 = vpop.f32.mrf.mxu1 }
0x10b8   :  { %v1026_v41 = vrot.slane %v1022_v37, 1  ;;  %v1027_v39 = vrot.slane %v1022_v37, 2  ;;  %v1205_v37 = vld [vmem:[#allocation12] sm:$0xff] }
0x10ba   :  { %v1030_v33 = vadd.f32 %v1026_v41, %v3476_v16  ;;  %v1031_v44 = vadd.f32 %v1027_v39, %v3473_v14 }
0x10bc   :  { %3063 = vtanh.f32 %v1030_v33  ;;  %v2798_v38 = vmul.f32 -1.442695, %v1031_v44  ;;  %v2797_v49 = vmul.f32 -1.442695, %v1030_v33  ;;  %v2946_v33 = vld [vmem:[%s3981_s7] ss:$0 sm:$0xff] }
0x10bd   :  { %3065 = vtanh.f32 %v1031_v44  ;;  %v2947_v44 = vld [vmem:[%s3982_s8] ss:$0 sm:$0xff]  ;;  %s3361_s7 = smov 100   ;;  %s3362_s8 = smov 120  }
0x10be   :  { %3067 = vpow2.f32 %v2798_v38 }
0x10c2   :  { %v3064_v36 = vpop.eup %3063 }
0x10c3   :  { %v3066_v45 = vpop.eup %3065  ;;  %1082 = vrot.lane.b32.xlu1 %v3064_v36, %s3354_s30 }
0x10c4   :  { %1084 = vrot.lane.b32.xlu2 %v3066_v45, %s3354_s30  ;;  %v3068_v47 = vpop.eup %3067 }
0x10c5   :  { %v1039_v48 = vadd.f32 1.0, %v3068_v47 }
0x10c7   :  { %3069 = vrcp.f32 %v1039_v48  ;;  %v1066_v56 = vand.u32 2147483648, %v1039_v48  ;;  %vm1060_vm15 = vweird.f32 %v1039_v48  ;;  %v1064_v40 = vand.u32 2147483647, %v1039_v48 }
0x10c8   :  { %3071 = vpow2.f32 %v2797_v49 }
0x10c9   :  { %v1067_v58 = vor.u32 1.1754944e-38, %v1066_v56  ;;  %vm1065_vm2 = vcmp.eq.f32.partialorder %v1064_v40, 8.507059e+37 }
0x10cd   :  { %v3070_v43 = vpop.eup %3069 }
0x10ce   :  { %v1056_v42 = vmul.f32 %v3070_v43, %v1039_v48  ;;  %v3072_v53 = vpop.eup %3071  ;;  %vm1061_vm14 = vweird.f32 %v3070_v43 }
0x10cf   :  { %v1038_v46 = vadd.f32 1.0, %v3072_v53  ;;  %vm1062_vm1 = vmor %vm1060_vm15, %vm1061_vm14 }
0x10d0   :  { %v1057_v16 = vsub.f32 1.0, %v1056_v42 }
0x10d1   :  { %3073 = vrcp.f32 %v1038_v46  ;;  %v1051_v63 = vand.u32 2147483648, %v1038_v46  ;;  %vm1045_vm4 = vweird.f32 %v1038_v46  ;;  %v1049_v0 = vand.u32 2147483647, %v1038_v46 }
0x10d2   :  { %v1058_v14 = vmul.f32 %v3070_v43, %v1057_v16 }
0x10d3   :  { %v1052_v2 = vor.u32 1.1754944e-38, %v1051_v63  ;;  %vm1050_vm7 = vcmp.eq.f32.partialorder %v1049_v0, 8.507059e+37 }
0x10d4   :  { %v1059_v55 = vadd.f32 %v3070_v43, %v1058_v14 }
0x10d6   :  { %v1063_v57 = vsel %vm1062_vm1, %v3070_v43, %v1059_v55 }
0x10d7   :  { %v1068_v62 = vsel %vm1065_vm2, %v1067_v58, %v1063_v57  ;;  %v3074_v54 = vpop.eup %3073 }
0x10d8   :  { %v1041_v59 = vmul.f32 %v3074_v54, %v1038_v46  ;;  %vm1046_vm3 = vweird.f32 %v3074_v54  ;;  %v1079_v7 = vmul.f32 %v1075_v6, %v1068_v62 }
0x10d9   :  { %vm1047_vm6 = vmor %vm1045_vm4, %vm1046_vm3 }
0x10da   :  { %v1042_v52 = vsub.f32 1.0, %v1041_v59 }
0x10dc   :  { %v1043_v60 = vmul.f32 %v3074_v54, %v1042_v52 }
0x10de   :  { %v1044_v61 = vadd.f32 %v3074_v54, %v1043_v60 }
0x10e0   :  { %v1048_v1 = vsel %vm1047_vm6, %v3074_v54, %v1044_v61 }
0x10e1   :  { %v1053_v4 = vsel %vm1050_vm7, %v1052_v2, %v1048_v1 }
0x10e2   :  { %v1078_v12 = vmul.f32 %v1074_v11, %v1053_v4 }
0x111e   :  { %v1085_v50 = vpop.permute.xlu2 %1084 }
0x111f   :  { %v1089_v51 = vmul.f32 %v1085_v50, %v1068_v62 }
0x1121   :  { %1094 = vrot.lane.b32.xlu1 %v1089_v51, %s3357_s3 }
0x1135   :  { %v1083_v3 = vpop.permute.xlu1 %1082 }
0x1136   :  { %v1088_v5 = vmul.f32 %v1083_v3, %v1053_v4 }
0x1138   :  { %1092 = vrot.lane.b32.xlu0 %v1088_v5, %s3357_s3 }
0x1193   :  { %v1095_v8 = vpop.permute.xlu1 %1094 }
0x1194   :  { %v1099_v9 = vadd.f32 %v1095_v8, %v1079_v7 }
0x1196   :  { %3075 = vtanh.f32 %v1099_v9 }
0x119c   :  { %v3076_v10 = vpop.eup %3075 }
0x119d   :  { %1106 = vrot.lane.b32.xlu0 %v3076_v10, %s3354_s30 }
0x11aa   :  { %v1093_v13 = vpop.permute.xlu0 %1092 }
0x11ab   :  { %v1098_v15 = vadd.f32 %v1093_v13, %v1078_v12  ;;  %v2945_v13 = vld [vmem:[%s3983_s9] ss:$0 sm:$0xff] }
0x11ad   :  { %3077 = vtanh.f32 %v1098_v15 }
0x11b3   :  { %v3078_v17 = vpop.eup %3077 }
0x11b4   :  { %1104 = vrot.lane.b32.xlu2 %v3078_v17, %s3354_s30 }
0x120e   :  { %v1105_v19 = vpop.permute.xlu2 %1104 }
0x120f   :  { %v1107_v20 = vpop.permute.xlu0 %1106  ;;  %v1110_v21 = vmul.f32 %v1105_v19, %v1053_v4 }
0x1210   :  { %v1111_v22 = vmul.f32 %v1107_v20, %v1068_v62 }
0x1211   :  { %v1131_v23 = vsel %vm1130_vm8, %v3646_v31, %v1110_v21  ;;  %v1206_v31 = vld [vmem:[#allocation12 + $0x8] sm:$0xff] }
0x1212   :  { %v1132_v24 = vsel %vm1130_vm8, %v3649_v27, %v1111_v22  ;;  %1143 = vrot.lane.b32.xlu1 %v1131_v23, %s3357_s3  ;;  %v1133_v27 = vld [vmem:[#allocation9] sm:$0xff]  ;;  %1227 = vmatpush.msra.mxu0 %v1206_v31 }
0x1213   :  { %1145 = vrot.lane.b32.xlu2 %v1132_v24, %s3357_s3  ;;  %1166 = vmatpush.msra.mxu2 %v1133_v27 }
0x1214   :  { %1228 = vmatpush.msra.mxu0 %v1205_v37 }
0x126d   :  { %v1146_v39 = vpop.permute.xlu2 %1145 }
0x1284   :  { %v1144_v41 = vpop.permute.xlu1 %1143 }
0x1285   :  { %2799 = vmatmul.msk.f32.vlgmr.msra.gmra.mxu2 %vm198_vm10, %v1144_v41  ;;  %2801 = vmatmul.msk.f32.vlgmr.msra.gmra.mxu3 %vm198_vm10, %v1144_v41 }
0x1286   :  { %2803 = vmatmul.msk.f32.vlgmr.msra.gmra.mxu0 %vm198_vm10, %v1144_v41 }
0x128d   :  { %2800 = vmatmul.msk.f32.gmra.mxu2 %vm198_vm10, %v1146_v39  ;;  %2802 = vmatmul.msk.f32.gmra.mxu3 %vm198_vm10, %v1146_v39 }
0x128e   :  { %2804 = vmatmul.msk.f32.gmra.mxu0 %vm198_vm10, %v1146_v39 }
0x1303   :  { %v1230_v9 = vpop.f32.mrf.mxu0 }
0x1304   :  { %v1231_v20 = vadd.f32 %v2945_v13, %v1230_v9 }
0x1308   :  { %v1168_v36 = vpop.f32.mrf.mxu2  ;;  %v1199_v45 = vpop.f32.mrf.mxu3 }
0x1309   :  { %v1169_v38 = vadd.f32 %v2946_v33, %v1168_v36  ;;  %v1200_v47 = vadd.f32 %v2947_v44, %v1199_v45 }
0x130b   :  { %v1236_v48 = vmul.f32 0.5, %v1169_v38  ;;  %1286 = vrot.lane.b32.xlu2 %v1200_v47, %s3358_s17  ;;  %1278 = vrot.lane.b32.xlu1 %v1200_v47, %s3359_s18  ;;  %v1233_v15 = vpop.f32.mrf.mxu0 }
0x130c   :  { %1270 = vrot.lane.b32.xlu0 %v1200_v47, %s3360_s19  ;;  %2805 = vmatpush.xpose.msk.msrb.mxu1 %vm1342_vm11, %v1200_v47  ;;  %v1234_v17 = vadd.f32 %v2945_v13, %v1233_v15 }
0x130f   :  { %2806 = vmatmul.msk.f32.vlgmr.msrb.gmra.mxu1 %vm1342_vm11, %v1236_v48 }
0x1310   :  { %v1171_v43 = vpop.f32.mrf.mxu2  ;;  %v1202_v49 = vpop.f32.mrf.mxu3 }
0x1311   :  { %v1172_v42 = vadd.f32 %v2946_v33, %v1171_v43  ;;  %v1203_v16 = vadd.f32 %v2947_v44, %v1202_v49 }
0x1313   :  { %v1237_v53 = vmul.f32 0.5, %v1172_v42  ;;  %1294 = vrot.lane.b32.xlu2 %v1200_v47, %s3361_s7  ;;  %1256 = vrot.lane.b32.xlu1 %v1236_v48, %s3358_s17 }
0x1314   :  { %1274 = vrot.lane.b32.xlu0 %v1200_v47, %s3362_s8  ;;  %2807 = vmatpush.xpose.msk.msra.mxu1 %vm1342_vm11, %v1203_v16 }
0x1317   :  { %2808 = vmatmul.msk.f32.vlgmr.msra.gmra.mxu1 %vm1342_vm11, %v1237_v53 }
0x131b   :  { %1240 = vrot.lane.b32.xlu2 %v1236_v48, %s3360_s19  ;;  %1272 = vrot.lane.b32.xlu1 %v1203_v16, %s3360_s19 }
0x131c   :  { %1248 = vrot.lane.b32.xlu0 %v1236_v48, %s3359_s18 }
0x1323   :  { %1280 = vrot.lane.b32.xlu2 %v1203_v16, %s3359_s18  ;;  %1276 = vrot.lane.b32.xlu1 %v1203_v16, %s3362_s8 }
0x1324   :  { %1288 = vrot.lane.b32.xlu0 %v1203_v16, %s3358_s17 }
0x132b   :  { %1282 = vrot.lane.b32.xlu2 %v1200_v47, %s3363_s6  ;;  %1250 = vrot.lane.b32.xlu1 %v1237_v53, %s3359_s18 }
0x132c   :  { %1242 = vrot.lane.b32.xlu0 %v1237_v53, %s3360_s19 }
0x1333   :  { %1258 = vrot.lane.b32.xlu2 %v1237_v53, %s3358_s17  ;;  %1244 = vrot.lane.b32.xlu1 %v1236_v48, %s3362_s8 }
0x1334   :  { %1296 = vrot.lane.b32.xlu0 %v1203_v16, %s3361_s7 }
0x133b   :  { %1246 = vrot.lane.b32.xlu2 %v1237_v53, %s3362_s8  ;;  %1266 = vrot.lane.b32.xlu1 %v1237_v53, %s3361_s7 }
0x133c   :  { %1264 = vrot.lane.b32.xlu0 %v1236_v48, %s3361_s7 }
0x1343   :  { %1254 = vrot.lane.b32.xlu2 %v1237_v53, %s3363_s6  ;;  %1252 = vrot.lane.b32.xlu1 %v1236_v48, %s3363_s6 }
0x1344   :  { %1284 = vrot.lane.b32.xlu0 %v1203_v16, %s3363_s6 }
0x134b   :  { %1260 = vrot.lane.b32.xlu2 %v1236_v48, %s3364_s20  ;;  %1292 = vrot.lane.b32.xlu1 %v1203_v16, %s3364_s20 }
0x134c   :  { %1290 = vrot.lane.b32.xlu0 %v1200_v47, %s3364_s20 }
0x1354   :  { %1262 = vrot.lane.b32.xlu0 %v1237_v53, %s3364_s20 }
0x1365   :  { %v1287_v14 = vpop.permute.xlu2 %1286 }
0x136d   :  { %v1295_v46 = vpop.permute.xlu2 %1294 }
0x1375   :  { %v1241_v55 = vpop.permute.xlu2 %1240 }
0x137d   :  { %v1279_v56 = vpop.permute.xlu1 %1278  ;;  %v1281_v40 = vpop.permute.xlu2 %1280 }
0x137e   :  { %v1271_v57 = vpop.permute.xlu0 %1270 }
0x137f   :  { %2809 = vmatpush.xpose.msk.msrb.mxu2 %vm1342_vm11, %v1271_v57 }
0x1382   :  { %2810 = vmatmul.msk.f32.vlgmr.msrb.gmra.mxu2 %vm1342_vm11, %v1241_v55 }
0x1383   :  { %2817 = vmatpush.xpose.msk.msra.mxu2 %vm1342_vm11, %v1279_v56 }
0x1385   :  { %v1257_v58 = vpop.permute.xlu1 %1256  ;;  %v1283_v50 = vpop.permute.xlu2 %1282 }
0x1386   :  { %v1275_v62 = vpop.permute.xlu0 %1274 }
0x1387   :  { %2825 = vmatpush.xpose.msk.msrb.mxu2 %vm1342_vm11, %v1287_v14  ;;  %2813 = vmatpush.xpose.msk.msrb.mxu0 %vm1342_vm11, %v1275_v62 }
0x138b   :  { %2821 = vmatpush.xpose.msk.msra.mxu0 %vm1342_vm11, %v1283_v50 }
0x138c   :  { %v3718_v54 = vpop.f32.mrf.mxu1 }
0x138d   :  { %v1273_v51 = vpop.permute.xlu1 %1272  ;;  %v1727_v59 = vsel %vm164_vm0, %v3718_v54, -inf  ;;  %v1259_v60 = vpop.permute.xlu2 %1258 }
0x138e   :  { %v1249_v52 = vpop.permute.xlu0 %1248  ;;  %1728 = vmax.xlane.f32.xlu1 %v1727_v59  ;;  %2811 = vmatpush.xpose.msk.msrb.mxu3 %vm1342_vm11, %v1273_v51 }
0x138f   :  { %2818 = vmatmul.msk.f32.vlgmr.msra.gmra.mxu2 %vm1342_vm11, %v1249_v52 }
0x1390   :  { %2833 = vmatpush.xpose.msk.msra.mxu2 %vm1342_vm11, %v1295_v46 }
0x1392   :  { %2819 = vmatpush.xpose.msk.msra.mxu3 %vm1342_vm11, %v1281_v40 }
0x1394   :  { %v1388_v61 = vpop.f32.mrf.mxu1 }
0x1395   :  { %v1277_v63 = vpop.permute.xlu1 %1276  ;;  %v1730_v0 = vsel %vm164_vm0, %v1388_v61, -inf  ;;  %v1247_v2 = vpop.permute.xlu2 %1246 }
0x1396   :  { %v1289_v1 = vpop.permute.xlu0 %1288  ;;  %1731 = vmax.xlane.f32.xlu2 %v1730_v0  ;;  %2815 = vmatpush.xpose.msk.msrb.mxu1 %vm1342_vm11, %v1277_v63 }
0x1397   :  { %2826 = vmatmul.msk.f32.vlgmr.msrb.gmra.mxu2 %vm1342_vm11, %v1257_v58  ;;  %v3800_v58 = vpack.i.bf16 %v1234_v17, %v1231_v20 }
0x1399   :  { %2816 = vmatmul.msk.f32.vlgmr.msrb.gmra.mxu1 %vm1342_vm11, %v1247_v2 }
0x139d   :  { %v1251_v3 = vpop.permute.xlu1 %1250  ;;  %v1255_v12 = vpop.permute.xlu2 %1254 }
0x139e   :  { %v1243_v4 = vpop.permute.xlu0 %1242 }
0x139f   :  { %2812 = vmatmul.msk.f32.vlgmr.msrb.gmra.mxu3 %vm1342_vm11, %v1243_v4 }
0x13a0   :  { %2827 = vmatpush.xpose.msk.msrb.mxu3 %vm1342_vm11, %v1289_v1 }
0x13a5   :  { %v1245_v5 = vpop.permute.xlu1 %1244  ;;  %v1261_v22 = vpop.permute.xlu2 %1260 }
0x13a6   :  { %v1297_v6 = vpop.permute.xlu0 %1296  ;;  %2814 = vmatmul.msk.f32.vlgmr.msrb.gmra.mxu0 %vm1342_vm11, %v1245_v5 }
0x13a7   :  { %2820 = vmatmul.msk.f32.vlgmr.msra.gmra.mxu3 %vm1342_vm11, %v1251_v3 }
0x13a8   :  { %2835 = vmatpush.xpose.msk.msra.mxu3 %vm1342_vm11, %v1297_v6 }
0x13ad   :  { %v1267_v7 = vpop.permute.xlu1 %1266 }
0x13ae   :  { %v1265_v8 = vpop.permute.xlu0 %1264 }
0x13af   :  { %2828 = vmatmul.msk.f32.vlgmr.msrb.gmra.mxu3 %vm1342_vm11, %v1259_v60  ;;  %2834 = vmatmul.msk.f32.vlgmr.msra.gmra.mxu2 %vm1342_vm11, %v1265_v8 }
0x13b5   :  { %v1253_v10 = vpop.permute.xlu1 %1252 }
0x13b6   :  { %v1285_v11 = vpop.permute.xlu0 %1284  ;;  %2822 = vmatmul.msk.f32.vlgmr.msra.gmra.mxu0 %vm1342_vm11, %v1253_v10 }
0x13b7   :  { %2823 = vmatpush.xpose.msk.msra.mxu1 %vm1342_vm11, %v1285_v11  ;;  %2836 = vmatmul.msk.f32.vlgmr.msra.gmra.mxu3 %vm1342_vm11, %v1267_v7 }
0x13ba   :  { %2824 = vmatmul.msk.f32.vlgmr.msra.gmra.mxu1 %vm1342_vm11, %v1255_v12 }
0x13bd   :  { %v1293_v19 = vpop.permute.xlu1 %1292 }
0x13be   :  { %v1291_v21 = vpop.permute.xlu0 %1290  ;;  %2831 = vmatpush.xpose.msk.msrb.mxu1 %vm1342_vm11, %v1293_v19 }
0x13bf   :  { %2829 = vmatpush.xpose.msk.msrb.mxu0 %vm1342_vm11, %v1291_v21 }
0x13c2   :  { %1944 = vmatpush.msra.mxu1 %v1234_v17  ;;  %2830 = vmatmul.msk.f32.vlgmr.msrb.gmra.mxu0 %vm1342_vm11, %v1261_v22 }
0x13c3   :  { %1921 = vmatpush.msra.mxu0 %v1231_v20 }
0x13c6   :  { %v1263_v23 = vpop.permute.xlu0 %1262 }
0x13c7   :  { %2832 = vmatmul.msk.f32.vlgmr.msrb.gmra.mxu1 %vm1342_vm11, %v1263_v23 }
0x1401   :  { %v1729_v27 = vpop.xlane.xlu1 %1728 }
0x1402   :  { %v1775_v35 = vsub.f32 %v3718_v54, %v1729_v27 }
0x1404   :  { %v1791_v33 = vmul.f32 1.442695, %v1775_v35 }
0x1405   :  { %v3748_v24 = vpop.f32.mrf.mxu2 }
0x1406   :  { %v1733_v18 = vsel %vm164_vm0, %v3748_v24, -inf }
0x1407   :  { %1734 = vmax.xlane.f32.xlu1 %v1733_v18 }
0x1409   :  { %v1732_v32 = vpop.xlane.xlu2 %1731 }
0x140a   :  { %v1776_v31 = vsub.f32 %v1388_v61, %v1732_v32 }
0x140c   :  { %v1793_v37 = vmul.f32 1.442695, %v1776_v31 }
0x140e   :  { %3079 = vpow2.f32 %v1793_v37 }
0x140f   :  { %3081 = vpow2.f32 %v1791_v33 }
0x1412   :  { %v3770_v45 = vpop.f32.mrf.mxu2 }
0x1413   :  { %v1745_v47 = vsel %vm164_vm0, %v3770_v45, -inf }
0x1414   :  { %v3776_v48 = vpop.eup %3079 }
0x1415   :  { %v1826_v42 = vsel %vm164_vm0, %v3776_v48, 0.0  ;;  %v3784_v16 = vpop.eup %3081 }
0x1416   :  { %v1484_v25 = vpop.f32.mrf.mxu1  ;;  %v1823_v53 = vsel %vm164_vm0, %v3784_v16, 0.0 }
0x1417   :  { %v1742_v26 = vsel %vm164_vm0, %v1484_v25, -inf }
0x1418   :  { %1743 = vmax.xlane.f32.xlu0 %v1742_v26 }
0x141a   :  { %v3788_v14 = vpop.f32.mrf.mxu2 }
0x141b   :  { %v1757_v54 = vsel %vm164_vm0, %v3788_v14, -inf }
0x1422   :  { %v3757_v28 = vpop.f32.mrf.mxu3 }
0x1423   :  { %v3753_v29 = vpop.f32.mrf.mxu0  ;;  %v1736_v34 = vsel %vm164_vm0, %v3757_v28, -inf }
0x1424   :  { %v1739_v30 = vsel %vm164_vm0, %v3753_v29, -inf }
0x1425   :  { %1740 = vmax.xlane.f32.xlu2 %v1739_v30 }
0x142a   :  { %v3772_v38 = vpop.f32.mrf.mxu3 }
0x142b   :  { %v1748_v55 = vsel %vm164_vm0, %v3772_v38, -inf }
0x142d   :  { %1737 = vmax.xlane.f32.xlu2 %v1736_v34 }
0x1432   :  { %v3790_v46 = vpop.f32.mrf.mxu3  ;;  %v3796_v40 = vpop.f32.mrf.mxu2 }
0x1433   :  { %v3762_v41 = vpop.f32.mrf.mxu0  ;;  %v1760_v56 = vsel %vm164_vm0, %v3790_v46, -inf  ;;  %v1769_v57 = vsel %vm164_vm0, %v3796_v40, -inf }
0x1434   :  { %v1751_v39 = vsel %vm164_vm0, %v3762_v41, -inf }
0x1435   :  { %1752 = vmax.xlane.f32.xlu0 %v1751_v39 }
0x1437   :  { %v3766_v44 = vpop.f32.mrf.mxu1 }
0x1438   :  { %v1754_v36 = vsel %vm164_vm0, %v3766_v44, -inf }
0x1439   :  { %1755 = vmax.xlane.f32.xlu1 %v1754_v36 }
0x143a   :  { %v3808_v50 = vpop.f32.mrf.mxu3 }
0x143b   :  { %v1772_v62 = vsel %vm164_vm0, %v3808_v50, -inf }
0x143d   :  { %1746 = vmax.xlane.f32.xlu0 %v1745_v47 }
0x143f   :  { %v3778_v43 = vpop.f32.mrf.mxu0 }
0x1440   :  { %v1763_v49 = vsel %vm164_vm0, %v3778_v43, -inf }
0x1441   :  { %1764 = vmax.xlane.f32.xlu2 %v1763_v49  ;;  %1827 = vadd.xlane.f32.xlu1 %v1826_v42 }
0x1444   :  { %v3814_v60 = vpop.f32.mrf.mxu1 }
0x1445   :  { %1824 = vadd.xlane.f32.xlu0 %v1823_v53  ;;  %v1766_v61 = vsel %vm164_vm0, %v3814_v60, -inf }
0x1449   :  { %1749 = vmax.xlane.f32.xlu2 %v1748_v55  ;;  %1761 = vmax.xlane.f32.xlu1 %v1760_v56 }
0x1451   :  { %1770 = vmax.xlane.f32.xlu1 %v1769_v57 }
0x1459   :  { %2913 = vrot.lane.b32.xlu0 %v3800_v58, %s3359_s18 }
0x1461   :  { %2908 = vrot.lane.b32.xlu2 %v3800_v58, %s3360_s19  ;;  %2918 = vrot.lane.b32.xlu0 %v3800_v58, %s3358_s17 }
0x147a   :  { %v1735_v1 = vpop.xlane.xlu1 %1734 }
0x147b   :  { %v1777_v4 = vsub.f32 %v3748_v24, %v1735_v1 }
0x147d   :  { %v1795_v6 = vmul.f32 1.442695, %v1777_v4 }
0x148a   :  { %1773 = vmax.xlane.f32.xlu2 %v1772_v62 }
0x148b   :  { %1758 = vmax.xlane.f32.xlu0 %v1757_v54  ;;  %v1744_v51 = vpop.xlane.xlu0 %1743 }
0x148c   :  { %v1780_v59 = vsub.f32 %v1484_v25, %v1744_v51 }
0x148e   :  { %v1801_v52 = vmul.f32 1.442695, %v1780_v59 }
0x1490   :  { %3083 = vpow2.f32 %v1801_v52 }
0x1493   :  { %1767 = vmax.xlane.f32.xlu0 %v1766_v61 }
0x1496   :  { %v3818_v63 = vpop.eup %3083 }
0x1497   :  { %v1838_v0 = vsel %vm164_vm0, %v3818_v63, 0.0 }
0x1498   :  { %1839 = vadd.xlane.f32.xlu2 %v1838_v0  ;;  %v1741_v2 = vpop.xlane.xlu2 %1740 }
0x1499   :  { %v1779_v3 = vsub.f32 %v3753_v29, %v1741_v2 }
0x149b   :  { %v1799_v5 = vmul.f32 1.442695, %v1779_v3 }
0x149d   :  { %3085 = vpow2.f32 %v1799_v5 }
0x149e   :  { %3087 = vpow2.f32 %v1795_v6 }
0x14a0   :  { %v1738_v7 = vpop.xlane.xlu2 %1737 }
0x14a1   :  { %v1778_v8 = vsub.f32 %v3757_v28, %v1738_v7 }
0x14a3   :  { %v3825_v9 = vpop.eup %3085  ;;  %v1797_v10 = vmul.f32 1.442695, %v1778_v8 }
0x14a4   :  { %v1835_v11 = vsel %vm164_vm0, %v3825_v9, 0.0  ;;  %v3829_v13 = vpop.eup %3087 }
0x14a5   :  { %3089 = vpow2.f32 %v1797_v10  ;;  %1836 = vadd.xlane.f32.xlu1 %v1835_v11  ;;  %v1829_v21 = vsel %vm164_vm0, %v3829_v13, 0.0 }
0x14a8   :  { %v1753_v12 = vpop.xlane.xlu0 %1752 }
0x14a9   :  { %v1783_v15 = vsub.f32 %v3762_v41, %v1753_v12 }
0x14ab   :  { %v3832_v17 = vpop.eup %3089  ;;  %v1807_v19 = vmul.f32 1.442695, %v1783_v15 }
0x14ac   :  { %v1756_v20 = vpop.xlane.xlu1 %1755  ;;  %v1832_v22 = vsel %vm164_vm0, %v3832_v17, 0.0 }
0x14ad   :  { %3091 = vpow2.f32 %v1807_v19  ;;  %1830 = vadd.xlane.f32.xlu1 %v1829_v21  ;;  %1833 = vadd.xlane.f32.xlu2 %v1832_v22  ;;  %v1784_v25 = vsub.f32 %v3766_v44, %v1756_v20 }
0x14af   :  { %v1809_v32 = vmul.f32 1.442695, %v1784_v25 }
0x14b0   :  { %v1747_v23 = vpop.xlane.xlu0 %1746 }
0x14b1   :  { %v1781_v24 = vsub.f32 %v3770_v45, %v1747_v23 }
0x14b3   :  { %v3839_v18 = vpop.eup %3091  ;;  %v1803_v26 = vmul.f32 1.442695, %v1781_v24 }
0x14b4   :  { %v1828_v29 = vpop.xlane.xlu1 %1827  ;;  %v3842_v30 = vpop.xlane.xlu2 %1764  ;;  %v1847_v28 = vsel %vm164_vm0, %v3839_v18, 0.0 }
0x14b5   :  { %3093 = vpow2.f32 %v1803_v26  ;;  %1848 = vadd.xlane.f32.xlu1 %v1847_v28 }
0x14b6   :  { %3095 = vrcp.f32 %v1828_v29 }
0x14b8   :  { %v1825_v34 = vpop.xlane.xlu0 %1824 }
0x14b9   :  { %3097 = vrcp.f32 %v1825_v34 }
0x14ba   :  { %3099 = vpow2.f32 %v1809_v32 }
0x14bb   :  { %v3846_v31 = vpop.eup %3093 }
0x14bc   :  { %v3096_v27 = vpop.eup %3095  ;;  %v1762_v35 = vpop.xlane.xlu1 %1761  ;;  %v1841_v41 = vsel %vm164_vm0, %v3846_v31, 0.0 }
0x14bd   :  { %v1750_v37 = vpop.xlane.xlu2 %1749  ;;  %v1888_v39 = vmul.f32 %v3096_v27, %v3776_v48  ;;  %1842 = vadd.xlane.f32.xlu0 %v1841_v41  ;;  %v1786_v45 = vsub.f32 %v3790_v46, %v1762_v35 }
0x14be   :  { %v1782_v33 = vsub.f32 %v3772_v38, %v1750_v37 }
0x14bf   :  { %2838 = vmatmul.msk.f32.vlgmr.msra.gmra.mxu1 %vm164_vm0, %v1888_v39  ;;  %v3098_v36 = vpop.eup %3097  ;;  %v1813_v42 = vmul.f32 1.442695, %v1786_v45 }
0x14c0   :  { %v1805_v44 = vmul.f32 1.442695, %v1782_v33  ;;  %v3854_v47 = vpop.eup %3099  ;;  %v1887_v49 = vmul.f32 %v3098_v36, %v3784_v16 }
0x14c1   :  { %v1850_v48 = vsel %vm164_vm0, %v3854_v47, 0.0 }
0x14c2   :  { %3101 = vpow2.f32 %v1805_v44  ;;  %2837 = vmatmul.msk.f32.vlgmr.msra.gmra.mxu0 %vm164_vm0, %v1887_v49 }
0x14c3   :  { %3103 = vpow2.f32 %v1813_v42 }
0x14c4   :  { %v1771_v38 = vpop.xlane.xlu1 %1770 }
0x14c5   :  { %v2909_v53 = vpop.permute.xlu2 %2908  ;;  %1851 = vadd.xlane.f32.xlu0 %v1850_v48  ;;  %2928 = vrot.lane.b32.xlu2 %v3800_v58, %s3361_s7  ;;  %v1789_v16 = vsub.f32 %v3796_v40, %v1771_v38 }
0x14c6   :  { %v2911_v55 = vunpack.i.h.bf16 %v2909_v53  ;;  %v2910_v56 = vunpack.i.l.bf16 %v2909_v53 }
0x14c7   :  { %v1819_v54 = vmul.f32 1.442695, %v1789_v16 }
0x14c8   :  { %1967 = vmatpush.msrb.mxu2 %v2910_v56  ;;  %1990 = vmatpush.msrb.mxu3 %v2911_v55  ;;  %v3862_v46 = vpop.eup %3101 }
0x14c9   :  { %v1844_v57 = vsel %vm164_vm0, %v3862_v46, 0.0  ;;  %v3869_v52 = vpop.eup %3103  ;;  %3105 = vpow2.f32 %v1819_v54  ;;  %v2273_v54 = vld [vmem:[#allocation14 + $0x8] sm:$0xf] }
0x14ca   :  { %1845 = vadd.xlane.f32.xlu1 %v1844_v57  ;;  %v1856_v61 = vsel %vm164_vm0, %v3869_v52, 0.0 }
0x14cb   :  { %v2914_v62 = vpop.permute.xlu0 %2913 }
0x14cc   :  { %v2916_v51 = vunpack.i.h.bf16 %v2914_v62  ;;  %v2915_v59 = vunpack.i.l.bf16 %v2914_v62 }
0x14cd   :  { %2933 = vrot.lane.b32.xlu2 %v3800_v58, %s3363_s6 }
0x14ce   :  { %2059 = vmatpush.msra.mxu2 %v2915_v59  ;;  %2082 = vmatpush.msra.mxu3 %v2916_v51  ;;  %v2274_v51 = vld [vmem:[#allocation14 + $0xc] sm:$0xf] }
0x14cf   :  { %v3873_v40 = vpop.eup %3105 }
0x14d0   :  { %v1865_v0 = vsel %vm164_vm0, %v3873_v40, 0.0 }
0x14d2   :  { %1857 = vadd.xlane.f32.xlu1 %v1856_v61 }
0x14d3   :  { %v2919_v1 = vpop.permute.xlu0 %2918 }
0x14d4   :  { %v2920_v29 = vunpack.i.l.bf16 %v2919_v1  ;;  %v2921_v32 = vunpack.i.h.bf16 %v2919_v1 }
0x14da   :  { %1866 = vadd.xlane.f32.xlu1 %v1865_v0 }
0x14fd   :  { %v1774_v2 = vpop.xlane.xlu2 %1773 }
0x14fe   :  { %v1790_v3 = vsub.f32 %v3808_v50, %v1774_v2  ;;  %v1759_v4 = vpop.xlane.xlu0 %1758 }
0x14ff   :  { %v1785_v5 = vsub.f32 %v3788_v14, %v1759_v4 }
0x1500   :  { %v1821_v6 = vmul.f32 1.442695, %v1790_v3 }
0x1501   :  { %v1811_v7 = vmul.f32 1.442695, %v1785_v5 }
0x1502   :  { %3107 = vpow2.f32 %v1821_v6 }
0x1503   :  { %3109 = vpow2.f32 %v1811_v7 }
0x1506   :  { %v1768_v8 = vpop.xlane.xlu0 %1767 }
0x1507   :  { %v1788_v10 = vsub.f32 %v3814_v60, %v1768_v8 }
0x1508   :  { %v3880_v11 = vpop.eup %3107 }
0x1509   :  { %v3882_v12 = vpop.eup %3109  ;;  %v1817_v15 = vmul.f32 1.442695, %v1788_v10  ;;  %v1868_v19 = vsel %vm164_vm0, %v3880_v11, 0.0 }
0x150a   :  { %1869 = vadd.xlane.f32.xlu1 %v1868_v19  ;;  %v1853_v50 = vsel %vm164_vm0, %v3882_v12, 0.0  ;;  %v2272_v19 = vld [vmem:[#allocation14 + $0x4] sm:$0xf] }
0x150b   :  { %3111 = vpow2.f32 %v1817_v15  ;;  %1854 = vadd.xlane.f32.xlu0 %v1853_v50  ;;  %v1840_v60 = vpop.xlane.xlu2 %1839 }
0x1511   :  { %v3888_v14 = vpop.eup %3111 }
0x1512   :  { %v1862_v20 = vsel %vm164_vm0, %v3888_v14, 0.0 }
0x1513   :  { %1863 = vadd.xlane.f32.xlu0 %v1862_v20 }
0x1518   :  { %v1837_v21 = vpop.xlane.xlu1 %1836 }
0x1520   :  { %v1831_v22 = vpop.xlane.xlu1 %1830  ;;  %v1834_v23 = vpop.xlane.xlu2 %1833 }
0x1521   :  { %3113 = vrcp.f32 %v1831_v22 }
0x1522   :  { %3115 = vrcp.f32 %v1834_v23  ;;  %v2282_v23 = vld [vmem:[#allocation14 + $0x2c] sm:$0xf] }
0x1523   :  { %2923 = vrot.lane.b32.xlu1 %v3800_v58, %s3362_s8 }
0x1527   :  { %v3114_v24 = vpop.eup %3113  ;;  %2938 = vrot.lane.b32.xlu0 %v3800_v58, %s3364_s20 }
0x1528   :  { %v3116_v25 = vpop.eup %3115  ;;  %v1889_v26 = vmul.f32 %v3114_v24, %v3829_v13  ;;  %v1849_v27 = vpop.xlane.xlu1 %1848  ;;  %v1787_v13 = vsub.f32 %v3778_v43, %v3842_v30 }
0x1529   :  { %v1890_v28 = vmul.f32 %v3116_v25, %v3832_v17  ;;  %v2929_v35 = vpop.permute.xlu2 %2928 }
0x152a   :  { %2839 = vmatmul.msk.f32.vlgmr.msrb.gmra.mxu2 %vm164_vm0, %v1889_v26  ;;  %v2930_v41 = vunpack.i.l.bf16 %v2929_v35  ;;  %v1815_v39 = vmul.f32 1.442695, %v1787_v13  ;;  %v2931_v45 = vunpack.i.h.bf16 %v2929_v35  ;;  %v2285_v35 = vld [vmem:[#allocation14 + $0x38] sm:$0xf]  ;;  %v2280_v13 = vld [vmem:[#allocation14 + $0x24] sm:$0xf] }
0x152b   :  { %2840 = vmatmul.msk.f32.vlgmr.msrb.gmra.mxu3 %vm164_vm0, %v1890_v28  ;;  %2151 = vmatpush.msrb.mxu2 %v2920_v29 }
0x152c   :  { %2174 = vmatpush.msrb.mxu3 %v2921_v32 }
0x1530   :  { %v1843_v34 = vpop.xlane.xlu0 %1842 }
0x1531   :  { %3117 = vrcp.f32 %v1843_v34  ;;  %v2934_v0 = vpop.permute.xlu2 %2933  ;;  %v2286_v34 = vld [vmem:[#allocation14 + $0x3c] sm:$0xf] }
0x1532   :  { %v2936_v5 = vunpack.i.h.bf16 %v2934_v0  ;;  %v2935_v6 = vunpack.i.l.bf16 %v2934_v0 }
0x1537   :  { %v3118_v37 = vpop.eup %3117 }
0x1538   :  { %v1893_v58 = vmul.f32 %v3118_v37, %v3846_v31  ;;  %v1852_v53 = vpop.xlane.xlu0 %1851  ;;  %v2275_v37 = vld [vmem:[#allocation14 + $0x10] sm:$0xf] }
0x153a   :  { %2843 = vmatmul.msk.f32.vlgmr.msra.gmra.mxu2 %vm164_vm0, %v1893_v58  ;;  %v2276_v58 = vld [vmem:[#allocation14 + $0x14] sm:$0xf] }
0x153b   :  { %2243 = vmatpush.msra.mxu2 %v2930_v41  ;;  %v2279_v41 = vld [vmem:[#allocation14 + $0x20] sm:$0xf] }
0x153d   :  { %v1846_v17 = vpop.xlane.xlu1 %1845 }
0x153e   :  { %3119 = vrcp.f32 %v1846_v17 }
0x153f   :  { %3121 = vpow2.f32 %v1815_v39  ;;  %v1923_v28 = vpop.f32.mrf.mxu0 }
0x1544   :  { %v3120_v33 = vpop.eup %3119 }
0x1545   :  { %v1894_v44 = vmul.f32 %v3120_v33, %v3862_v46  ;;  %v1858_v36 = vpop.xlane.xlu1 %1857  ;;  %v3906_v31 = vpop.eup %3121 }
0x1546   :  { %3123 = vrcp.f32 %v1858_v36  ;;  %v1859_v43 = vsel %vm164_vm0, %v3906_v31, 0.0 }
0x1547   :  { %2844 = vmatmul.msk.f32.vlgmr.msra.gmra.mxu3 %vm164_vm0, %v1894_v44  ;;  %v2284_v44 = vld [vmem:[#allocation14 + $0x34] sm:$0xf] }
0x1548   :  { %2266 = vmatpush.msra.mxu3 %v2931_v45 }
0x154c   :  { %v3124_v49 = vpop.eup %3123 }
0x154d   :  { %v1898_v30 = vmul.f32 %v3124_v49, %v3869_v52  ;;  %1860 = vadd.xlane.f32.xlu1 %v1859_v43  ;;  %v1867_v42 = vpop.xlane.xlu1 %1866  ;;  %v2283_v43 = vld [vmem:[#allocation14 + $0x30] sm:$0xf] }
0x154f   :  { %2848 = vmatmul.msk.f32.vlgmr.msrb.gmra.mxu3 %vm164_vm0, %v1898_v30 }
0x1550   :  { %2859 = vmatpush.msk.msrb.mxu3 %vm1121_vm5, %v2274_v51 }
0x157d   :  { %v1870_v48 = vpop.xlane.xlu1 %1869 }
0x157e   :  { %3125 = vrcp.f32 %v1870_v48  ;;  %v1855_v38 = vpop.xlane.xlu0 %1854 }
0x157f   :  { %3127 = vrcp.f32 %v1855_v38 }
0x1580   :  { %3129 = vrcp.f32 %v1867_v42 }
0x1581   :  { %3131 = vrcp.f32 %v1840_v60  ;;  %v2278_v60 = vld [vmem:[#allocation14 + $0x1c] sm:$0xf] }
0x1582   :  { %3133 = vrcp.f32 %v1837_v21 }
0x1583   :  { %3135 = vrcp.f32 %v1849_v27  ;;  %v2281_v27 = vld [vmem:[#allocation14 + $0x28] sm:$0xf] }
0x1584   :  { %v3126_v55 = vpop.eup %3125  ;;  %3137 = vrcp.f32 %v1852_v53  ;;  %v3365_v53 = vmov 0  }
0x1585   :  { %v3128_v56 = vpop.eup %3127  ;;  %v1902_v46 = vmul.f32 %v3126_v55, %v3880_v11  ;;  %2942 = vset.pattern.permute.xlu1 %v3365_v53  ;;  %2943 = vset.pattern.permute.xlu0 %v3365_v53  ;;  %v2950_v55 = vld [vmem:[#allocation2] ss:$0 sm:$0xff] }
0x1586   :  { %v1897_v16 = vmul.f32 %v3128_v56, %v3882_v12  ;;  %v3130_v57 = vpop.eup %3129  ;;  %v1864_v59 = vpop.xlane.xlu0 %1863  ;;  %2739 = vperm.xlu1 %2942, %v2950_v55  }
0x1587   :  { %2852 = vmatmul.msk.f32.vlgmr.msra.gmra.mxu3 %vm164_vm0, %v1902_v46  ;;  %v1901_v62 = vmul.f32 %v3130_v57, %v3873_v40  ;;  %v3132_v52 = vpop.eup %3131  ;;  %3139 = vrcp.f32 %v1864_v59 }
0x1588   :  { %2847 = vmatmul.msk.f32.vlgmr.msrb.gmra.mxu2 %vm164_vm0, %v1897_v16  ;;  %v3134_v61 = vpop.eup %3133  ;;  %v1892_v4 = vmul.f32 %v3132_v52, %v3818_v63  ;;  %v2277_v63 = vld [vmem:[#allocation14 + $0x18] sm:$0xf]  ;;  %2867 = vmatpush.msk.msra.mxu3 %vm1121_vm5, %v2278_v60 }
0x1589   :  { %2857 = vmatpush.msk.msrb.mxu2 %vm1121_vm5, %v2273_v54  ;;  %v1891_v40 = vmul.f32 %v3134_v61, %v3825_v9  ;;  %v3136_v11 = vpop.eup %3135 }
0x158a   :  { %v3138_v12 = vpop.eup %3137  ;;  %v1895_v9 = vmul.f32 %v3136_v11, %v3839_v18  ;;  %v1946_v18 = vpop.f32.mrf.mxu1 }
0x158b   :  { %v1896_v15 = vmul.f32 %v3138_v12, %v3854_v47  ;;  %v2271_v47 = vld [vmem:[#allocation14] sm:$0xf] }
0x158d   :  { %v3140_v50 = vpop.eup %3139 }
0x158e   :  { %v1900_v20 = vmul.f32 %v3140_v50, %v3888_v14 }
0x1590   :  { %2851 = vmatmul.msk.f32.vlgmr.msra.gmra.mxu2 %vm164_vm0, %v1901_v62 }
0x1591   :  { %2865 = vmatpush.msk.msra.mxu2 %vm1121_vm5, %v2277_v63 }
0x1595   :  { %v2924_v1 = vpop.permute.xlu1 %2923 }
0x1596   :  { %v2926_v2 = vunpack.i.h.bf16 %v2924_v1  ;;  %v2925_v3 = vunpack.i.l.bf16 %v2924_v1  ;;  %v2948_v1 = vld [vmem:[%s3985_s11] ss:$0 sm:$0xff]  ;;  %s3366_s11 = smov [#allocation15]  }
0x1598   :  { %2013 = vmatpush.msrb.mxu0 %v2925_v3  ;;  %2036 = vmatpush.msrb.mxu1 %v2926_v2 }
0x1599   :  { %2841 = vmatmul.msk.f32.vlgmr.msrb.gmra.mxu0 %vm164_vm0, %v1891_v40  ;;  %2842 = vmatmul.msk.f32.vlgmr.msrb.gmra.mxu1 %vm164_vm0, %v1892_v4  ;;  %v2939_v7 = vpop.permute.xlu0 %2938  ;;  %v2949_v4 = vld [vmem:[%s3986_s12] ss:$0 sm:$0xff]  ;;  %s2759_s12 = sshll.u32 %s3366_s11, 4  ;;  %s2760_s12 = int_to_ptr.vmem [resolvable:$true] %s2759_s12 }
0x159a   :  { %2105 = vmatpush.msra.mxu0 %v2935_v6  ;;  %2128 = vmatpush.msra.mxu1 %v2936_v5  ;;  %v2941_v8 = vunpack.i.h.bf16 %v2939_v7  ;;  %v2940_v10 = vunpack.i.l.bf16 %v2939_v7 }
0x159c   :  { %2197 = vmatpush.msrb.mxu0 %v2940_v10  ;;  %2220 = vmatpush.msrb.mxu1 %v2941_v8 }
0x15a1   :  { %2845 = vmatmul.msk.f32.vlgmr.msra.gmra.mxu0 %vm164_vm0, %v1895_v9  ;;  %2846 = vmatmul.msk.f32.vlgmr.msra.gmra.mxu1 %vm164_vm0, %v1896_v15 }
0x15a2   :  { %2855 = vmatpush.msk.msra.mxu1 %vm1121_vm5, %v2272_v19  ;;  %2853 = vmatpush.msk.msra.mxu0 %vm1121_vm5, %v2271_v47 }
0x15a9   :  { %2850 = vmatmul.msk.f32.vlgmr.msrb.gmra.mxu1 %vm164_vm0, %v1900_v20 }
0x15aa   :  { %2863 = vmatpush.msk.msrb.mxu1 %vm1121_vm5, %v2276_v58 }
0x15ad   :  { %v1969_v21 = vpop.f32.mrf.mxu2 }
0x15ae   :  { %v1992_v22 = vpop.f32.mrf.mxu3  ;;  %2858 = vmatmul.msk.f32.vlgmr.msrb.gmra.mxu2 %vm1342_vm11, %v1969_v21 }
0x15af   :  { %2860 = vmatmul.msk.f32.vlgmr.msrb.gmra.mxu3 %vm1342_vm11, %v1992_v22  ;;  %2873 = vmatpush.msk.msrb.mxu2 %vm1121_vm5, %v2281_v27 }
0x15b0   :  { %2875 = vmatpush.msk.msrb.mxu3 %vm1121_vm5, %v2282_v23 }
0x15b1   :  { %2856 = vmatmul.msk.f32.vlgmr.msra.gmra.mxu1 %vm1342_vm11, %v1946_v18 }
0x15b2   :  { %2871 = vmatpush.msk.msra.mxu1 %vm1121_vm5, %v2280_v13 }
0x15bd   :  { %v2061_v14 = vpop.f32.mrf.mxu2 }
0x15be   :  { %2866 = vmatmul.msk.f32.vlgmr.msra.gmra.mxu2 %vm1342_vm11, %v2061_v14 }
0x15bf   :  { %2881 = vmatpush.msk.msra.mxu2 %vm1121_vm5, %v2285_v35 }
0x15c0   :  { %v1861_v24 = vpop.xlane.xlu1 %1860 }
0x15c1   :  { %3141 = vrcp.f32 %v1861_v24  ;;  %v2746_v24 = vlaneseq }
0x15c7   :  { %v3142_v25 = vpop.eup %3141 }
0x15c8   :  { %v1899_v26 = vmul.f32 %v3142_v25, %v3906_v31 }
0x15ca   :  { %v2084_v29 = vpop.f32.mrf.mxu3  ;;  %2849 = vmatmul.msk.f32.vlgmr.msrb.gmra.mxu0 %vm164_vm0, %v1899_v26  ;;  %vm2752_vm0 = vcmask 58368  }
0x15cb   :  { %2868 = vmatmul.msk.f32.vlgmr.msra.gmra.mxu3 %vm1342_vm11, %v2084_v29  ;;  %2861 = vmatpush.msk.msrb.mxu0 %vm1121_vm5, %v2275_v37  ;;  %v2747_v29 = vand.u32 127, %v2746_v24 }
0x15cc   :  { %2883 = vmatpush.msk.msra.mxu3 %vm1121_vm5, %v2286_v34 }
0x15d2   :  { %v2176_v32 = vpop.f32.mrf.mxu3  ;;  %2854 = vmatmul.msk.f32.vlgmr.msra.gmra.mxu0 %vm1342_vm11, %v1923_v28 }
0x15d3   :  { %2876 = vmatmul.msk.f32.vlgmr.msrb.gmra.mxu3 %vm1342_vm11, %v2176_v32  ;;  %2869 = vmatpush.msk.msra.mxu0 %vm1121_vm5, %v2279_v41 }
0x15f8   :  { %v2740_v25 = vpop.permute.xlu1 %2739 }
0x160a   :  { %v2268_v17 = vpop.f32.mrf.mxu3 }
0x160b   :  { %2884 = vmatmul.msk.f32.vlgmr.msra.gmra.mxu3 %vm1342_vm11, %v2268_v17  ;;  %v2153_v39 = vpop.f32.mrf.mxu2 }
0x160c   :  { %2874 = vmatmul.msk.f32.vlgmr.msrb.gmra.mxu2 %vm1342_vm11, %v2153_v39 }
0x1613   :  { %v2245_v33 = vpop.f32.mrf.mxu2 }
0x1614   :  { %2882 = vmatmul.msk.f32.vlgmr.msra.gmra.mxu2 %vm1342_vm11, %v2245_v33 }
0x1616   :  { %v2015_v36 = vpop.f32.mrf.mxu0  ;;  %v2038_v45 = vpop.f32.mrf.mxu1 }
0x1617   :  { %2862 = vmatmul.msk.f32.vlgmr.msrb.gmra.mxu0 %vm1342_vm11, %v2015_v36  ;;  %2864 = vmatmul.msk.f32.vlgmr.msrb.gmra.mxu1 %vm1342_vm11, %v2038_v45 }
0x1618   :  { %2879 = vmatpush.msk.msrb.mxu1 %vm1121_vm5, %v2284_v44  ;;  %2877 = vmatpush.msk.msrb.mxu0 %vm1121_vm5, %v2283_v43 }
0x161e   :  { %v2107_v31 = vpop.f32.mrf.mxu0  ;;  %v2130_v49 = vpop.f32.mrf.mxu1 }
0x161f   :  { %2870 = vmatmul.msk.f32.vlgmr.msra.gmra.mxu0 %vm1342_vm11, %v2107_v31  ;;  %2872 = vmatmul.msk.f32.vlgmr.msra.gmra.mxu1 %vm1342_vm11, %v2130_v49 }
0x1626   :  { %v2222_v30 = vpop.f32.mrf.mxu1 }
0x1627   :  { %2880 = vmatmul.msk.f32.vlgmr.msrb.gmra.mxu1 %vm1342_vm11, %v2222_v30 }
0x162e   :  { %v2336_v48 = vpop.f32.mrf.mxu1 }
0x1631   :  { %v2362_v7 = vpop.f32.mrf.mxu2 }
0x1632   :  { %v2388_v38 = vpop.f32.mrf.mxu3 }
0x1633   :  { %v2704_v16 = vadd.f32 %v2388_v38, %v2336_v48 }
0x1641   :  { %v2466_v11 = vpop.f32.mrf.mxu2 }
0x1647   :  { %v2199_v42 = vpop.f32.mrf.mxu0 }
0x1648   :  { %2878 = vmatmul.msk.f32.vlgmr.msrb.gmra.mxu0 %vm1342_vm11, %v2199_v42 }
0x164e   :  { %v2492_v56 = vpop.f32.mrf.mxu3 }
0x164f   :  { %v2310_v5 = vpop.f32.mrf.mxu0 }
0x1650   :  { %v2703_v12 = vadd.f32 %v2362_v7, %v2310_v5 }
0x1656   :  { %v2596_v51 = vpop.f32.mrf.mxu3 }
0x168e   :  { %v2700_v2 = vpop.f32.mrf.mxu3 }
0x168f   :  { %v2570_v9 = vpop.f32.mrf.mxu2 }
0x1694   :  { %v2440_v46 = vpop.f32.mrf.mxu1  ;;  %v2414_v10 = vpop.f32.mrf.mxu0 }
0x1695   :  { %v2706_v57 = vadd.f32 %v2704_v16, %v2440_v46  ;;  %v2705_v63 = vadd.f32 %v2703_v12, %v2414_v10 }
0x1697   :  { %v2708_v54 = vadd.f32 %v2706_v57, %v2492_v56  ;;  %v2707_v19 = vadd.f32 %v2705_v63, %v2466_v11  ;;  %v2674_v22 = vpop.f32.mrf.mxu2 }
0x169c   :  { %v2544_v62 = vpop.f32.mrf.mxu1  ;;  %v2518_v15 = vpop.f32.mrf.mxu0 }
0x169d   :  { %v2710_v59 = vadd.f32 %v2708_v54, %v2544_v62  ;;  %v2709_v50 = vadd.f32 %v2707_v19, %v2518_v15 }
0x169f   :  { %v2712_v52 = vadd.f32 %v2710_v59, %v2596_v51  ;;  %v2711_v20 = vadd.f32 %v2709_v50, %v2570_v9 }
0x16a4   :  { %v2648_v61 = vpop.f32.mrf.mxu1 }
0x16a5   :  { %v2714_v0 = vadd.f32 %v2712_v52, %v2648_v61 }
0x16a7   :  { %v2716_v3 = vadd.f32 %v2714_v0, %v2700_v2 }
0x16a9   :  { %v2722_v40 = vadd.f32 %v2948_v1, %v2716_v3 }
0x16ab   :  { %v2728_v6 = vmul.f32 %v2949_v4, %v2722_v40 }
0x16ad   :  { %v2732_v8 = vsel %vm198_vm10, %v2728_v6, 0.0 }
0x16ae   :  { %2733 = vadd.xlane.f32.xlu0 %v2732_v8 }
0x16c5   :  { %v2622_v60 = vpop.f32.mrf.mxu0 }
0x16c6   :  { %v2713_v21 = vadd.f32 %v2711_v20, %v2622_v60 }
0x16c8   :  { %v2715_v18 = vadd.f32 %v2713_v21, %v2674_v22 }
0x16ca   :  { %v2721_v47 = vadd.f32 %v2948_v1, %v2715_v18 }
0x16cc   :  { %v2727_v23 = vmul.f32 %v2949_v4, %v2721_v47 }
0x16ce   :  { %v2729_v14 = vsel %vm198_vm10, %v2727_v23, 0.0 }
0x16cf   :  { %2730 = vadd.xlane.f32.xlu2 %v2729_v14 }
0x1721   :  { %v2734_v26 = vpop.xlane.xlu0 %2733 }
0x1722   :  { %v2743_v28 = vadd.f32 %v2740_v25, %v2734_v26 }
0x1724   :  { %v2749_v27 = vperm.slane %v2743_v28, %v2747_v29 }
0x1742   :  { %v2731_v32 = vpop.xlane.xlu2 %2730 }
0x1743   :  { %v2742_v34 = vadd.f32 %v2740_v25, %v2731_v32 }
0x1745   :  { %v2748_v35 = vperm.slane %v2742_v34, %v2747_v29 }
0x1747   :  { %v2750_v37 = vsel %vm305_vm9, %v2749_v27, %v2748_v35 }
0x1748   :  { %2753 = vst.msk [vmem:[#allocation15] sm:$0x3] %vm2752_vm0, %v2750_v37 }
0x1749   :  { %2764 = dma.vmem_to_hbm [thread:$0]  %s2760_s12, 32, %s2762_s26, [#allocation5]  }
0x174a   :  { %3343 = dma.done.wait [#allocation5], 32  }
0x174b   :  { %3344 = vsyncadd [#allocation5], 4294967264 }
0x174c   :  { %2769 = vsyncpa [#allocation4], 1 }
0x174d   :  { %2770 = vsyncpa [#allocation7], 1 }
0x174e   :  { %2771 = vsyncpa [#allocation10], 1 }
0x174f   :  { %2772 = vsyncpa [#allocation13], 1 }
0x1750   :  { %2773 = vsyncpa [#allocation5], 1 }

</bundles_post_ra>
